<compile_context>
chip_gen: v7x
topology: tpu7x:2x2x1
jax: 0.10.0
libtpu: 0.0.40
codegen_flags: <defaults>
</compile_context>

<pallas_src>
import functools

import jax
import jax.numpy as jnp
from jax.experimental import pallas as pl
from jax.experimental.pallas import tpu as pltpu


def _convlstm_cell_kernel(patch_ref, c_ref, w_ref, b_ref, h_out_ref, c_out_ref,
                          *, HID, HW, N_TILE):
    """One batch element per grid step.

    patch_ref : (1, K_pad, HW)   im2col of concat([x, h_cur]), bf16, channel-major
    c_ref     : (1, HID, HW)     current cell state, f32
    w_ref     : (4*HID, K_pad)   fused conv weights, bf16
    b_ref     : (4*HID, 1)       conv bias, f32
    h_out_ref : (1, HID, HW)     next hidden state (input dtype)
    c_out_ref : (1, HID, HW)     next cell state (f32)
    """
    bias_col = b_ref[...]                                   # (4*HID, 1) f32

    # Fully fused per pixel tile (128 lanes): matmul -> bias -> nonlinearity
    # -> gate combine -> store.  Each iteration's values die at its stores.
    for n0 in range(0, HW, N_TILE):
        # Fused-gate conv for this tile: single MXU matmul, f32 accumulation.
        gates = jnp.dot(w_ref[...], patch_ref[0, :, n0:n0 + N_TILE],
                        preferred_element_type=jnp.float32)  # (4*HID, N_TILE)
        gates = gates + bias_col

        # Rows [0, 3*HID) are i|f|o (sigmoid), rows [3*HID, 4*HID) are g (tanh).
        # sigmoid(x) = 0.5 * tanh(0.5*x) + 0.5.  All slices are sublane-aligned
        # (multiples of 8) and full 128-lane wide.
        sig = 0.5 * jnp.tanh(0.5 * gates[0:3 * HID, :]) + 0.5
        g = jnp.tanh(gates[3 * HID:4 * HID, :])
        i = sig[0:HID, :]
        f = sig[HID:2 * HID, :]
        o = sig[2 * HID:3 * HID, :]

        c_cur = c_ref[0, :, n0:n0 + N_TILE]                  # (HID, N_TILE) f32
        c_next = f * c_cur + i * g
        h_next = o * jnp.tanh(c_next)

        c_out_ref[0, :, n0:n0 + N_TILE] = c_next.astype(c_out_ref.dtype)
        h_out_ref[0, :, n0:n0 + N_TILE] = h_next.astype(h_out_ref.dtype)


def convlstm_cell_forward(x_nchw, h_cur_nchw, c_cur_nchw, w_oihw, bias,
                          kernel_size=(3, 3)):
    """ConvLSTMCell.forward — NCHW in / NCHW out (PyTorch convention)."""
    B, CX, H, W = x_nchw.shape
    HID = h_cur_nchw.shape[1]
    KH, KW = kernel_size
    PH, PW = KH // 2, KW // 2
    CIN = CX + HID
    G4 = 4 * HID
    HW = H * W
    LANES = 128
    assert w_oihw.shape == (G4, CIN, KH, KW)
    assert HID % 8 == 0, "hidden_dim must be a multiple of 8 (sublane-aligned gate rows)"
    assert HW % LANES == 0, "H*W must be a multiple of 128 (lane-dense pixel axis)"
    # TODO(synk): pad the pixel axis in the wrapper for H*W not a multiple of 128.

    K_real = KH * KW * CIN
    K_pad = ((K_real + LANES - 1) // LANES) * LANES            # 324 -> 384

    # --- wrapper-side im2col, channel-major: patches[b, t*CIN + c, y*W + x]. ---
    combined = jnp.concatenate([x_nchw, h_cur_nchw], axis=1).astype(jnp.float32)  # (B,CIN,H,W)
    comb_pad = jnp.pad(combined, ((0, 0), (0, 0), (PH, PH), (PW, PW)))
    taps = [comb_pad[:, :, dh:dh + H, dw:dw + W].reshape(B, CIN, HW)
            for dh in range(KH) for dw in range(KW)]
    patches = jnp.concatenate(taps, axis=1)                                       # (B, 9*CIN, HW)
    patches = jnp.pad(patches,
                      ((0, 0), (0, K_pad - K_real), (0, 0))).astype(jnp.bfloat16)

    # Cell state: (B, HID, H*W) is a pure reshape of NCHW; kept f32.
    c_in = c_cur_nchw.reshape(B, HID, HW).astype(jnp.float32)

    # Weights: (O, I, KH, KW) -> (O, KH*KW*I) matching the patch K order; pad K; bf16.
    w_mat = jnp.transpose(w_oihw, (0, 2, 3, 1)).reshape(G4, K_real)
    w_mat = jnp.pad(w_mat, ((0, 0), (0, K_pad - K_real))).astype(jnp.bfloat16)
    b_col = bias.reshape(G4, 1).astype(jnp.float32)

    N_TILE = 128
    kernel = functools.partial(_convlstm_cell_kernel, HID=HID, HW=HW, N_TILE=N_TILE)

    h_dtype = x_nchw.dtype
    cost = pl.CostEstimate(
        flops=2 * B * G4 * K_pad * HW + 10 * B * HID * HW,
        transcendentals=B * HW * (G4 + HID),
        bytes_accessed=(patches.size * 2 + w_mat.size * 2 + b_col.size * 4
                        + c_in.size * 4
                        + B * HID * HW * (4 + jnp.dtype(h_dtype).itemsize)),
    )

    h_flat, c_flat = pl.pallas_call(
        kernel,
        out_shape=(jax.ShapeDtypeStruct((B, HID, HW), h_dtype),
                   jax.ShapeDtypeStruct((B, HID, HW), jnp.float32)),
        grid_spec=pltpu.PrefetchScalarGridSpec(
            num_scalar_prefetch=0,
            grid=(B,),
            in_specs=[
                pl.BlockSpec((1, K_pad, HW), lambda b: (b, 0, 0)),   # im2col patches
                pl.BlockSpec((1, HID, HW), lambda b: (b, 0, 0)),     # c_cur
                pl.BlockSpec((G4, K_pad), lambda b: (0, 0)),         # fused weights
                pl.BlockSpec((G4, 1), lambda b: (0, 0)),             # bias
            ],
            out_specs=[
                pl.BlockSpec((1, HID, HW), lambda b: (b, 0, 0)),     # h_next
                pl.BlockSpec((1, HID, HW), lambda b: (b, 0, 0)),     # c_next (f32)
            ],
        ),
        compiler_params=pltpu.CompilerParams(
            dimension_semantics=("parallel",)),
        cost_estimate=cost,
    )(patches, c_in, w_mat, b_col)

    h_next = h_flat.reshape(B, HID, H, W)          # pure reshape back to NCHW
    c_next = c_flat.reshape(B, HID, H, W)
    return h_next, c_next


def _reference_forward(x, h, c, w_oihw, bias, quantize_matmul=False):
    """Pure-JAX reference replicating the PyTorch forward (NCHW, f32 math).

    With quantize_matmul=True the conv operands are rounded to bf16 (matching
    the kernel's MXU operands) while accumulation stays f32, so the rest of
    the pipeline can be compared at tight tolerance.
    """
    combined = jnp.concatenate([x, h], axis=1).astype(jnp.float32)
    w = w_oihw.astype(jnp.float32)
    if quantize_matmul:
        combined = combined.astype(jnp.bfloat16).astype(jnp.float32)
        w = w.astype(jnp.bfloat16).astype(jnp.float32)
    out = jax.lax.conv_general_dilated(
        combined, w, window_strides=(1, 1), padding="SAME",
        dimension_numbers=("NCHW", "OIHW", "NCHW"))
    out = out + bias.astype(jnp.float32)[None, :, None, None]
    cc_i, cc_f, cc_o, cc_g = jnp.split(out, 4, axis=1)
    i = jax.nn.sigmoid(cc_i)
    f = jax.nn.sigmoid(cc_f)
    o = jax.nn.sigmoid(cc_o)
    g = jnp.tanh(cc_g)
    c_next = f * c.astype(jnp.float32) + i * g
    h_next = o * jnp.tanh(c_next)
    return h_next, c_next


if __name__ == "__main__":
    B, INPUT_DIM, HIDDEN_DIM, H, W = 2, 4, 32, 16, 16
    KH, KW = 3, 3
    CIN = INPUT_DIM + HIDDEN_DIM

    key = jax.random.PRNGKey(0)
    kx, khk, kck, kwk = jax.random.split(key, 4)

    x = jax.random.normal(kx, (B, INPUT_DIM, H, W), dtype=jnp.float32)
    h_cur = jax.random.normal(khk, (B, HIDDEN_DIM, H, W), dtype=jnp.float32)
    c_cur = jax.random.normal(kck, (B, HIDDEN_DIM, H, W), dtype=jnp.float32)

    # nn.Conv2d(CIN, 4*HIDDEN, 3, padding=1) parameters.
    # TODO(synk): PyTorch uses orthogonal_ init; deterministic Gaussian stands in here.
    w_oihw = 0.1 * jax.random.normal(kwk, (4 * HIDDEN_DIM, CIN, KH, KW),
                                     dtype=jnp.float32)
    bias = jnp.zeros((4 * HIDDEN_DIM,), dtype=jnp.float32)
    bias = bias.at[HIDDEN_DIM:2 * HIDDEN_DIM].set(1.0)   # forget-gate bias = 1

    h_next, c_next = convlstm_cell_forward(x, h_cur, c_cur, w_oihw, bias,
                                           kernel_size=(KH, KW))
    jax.block_until_ready((h_next, c_next))

    assert h_next.shape == (B, HIDDEN_DIM, H, W)
    assert c_next.shape == (B, HIDDEN_DIM, H, W)
    assert c_next.dtype == jnp.float32

    # Tight check vs a reference whose conv operands are also bf16-rounded
    # (isolates the non-matmul path; only summation order / sigmoid impl differ).
    h_q, c_q = _reference_forward(x, h_cur, c_cur, w_oihw, bias, quantize_matmul=True)
    assert jnp.allclose(h_next, h_q, atol=1e-4, rtol=1e-4), \
        float(jnp.max(jnp.abs(h_next - h_q)))
    assert jnp.allclose(c_next, c_q, atol=1e-4, rtol=1e-4), \
        float(jnp.max(jnp.abs(c_next - c_q)))

    # Loose sanity check vs the pure-f32 reference (bf16 MXU operand quantization).
    h_f, c_f = _reference_forward(x, h_cur, c_cur, w_oihw, bias, quantize_matmul=False)
    assert jnp.allclose(h_next, h_f, atol=3e-2, rtol=3e-2), \
        float(jnp.max(jnp.abs(h_next - h_f)))
    assert jnp.allclose(c_next, c_f, atol=3e-2, rtol=3e-2), \
        float(jnp.max(jnp.abs(c_next - c_f)))

    print("KERNEL_OK")
</pallas_src>

<mosaic_0001>
module attributes {stable_mosaic.version = 11 : i64} {
  func.func @_convlstm_cell_kernel(%arg0: i32, %arg1: memref<1x384x256xbf16, #tpu.memory_space<vmem>>, %arg2: memref<1x32x256xf32, #tpu.memory_space<vmem>>, %arg3: memref<128x384xbf16, #tpu.memory_space<vmem>>, %arg4: memref<128x1xf32, #tpu.memory_space<vmem>>, %arg5: memref<1x32x256xf32, #tpu.memory_space<vmem>>, %arg6: memref<1x32x256xf32, #tpu.memory_space<vmem>>) attributes {dimension_semantics = [#tpu.dimension_semantics<parallel>], iteration_bounds = array<i64: 2>, scalar_prefetch = 0 : i64, scratch_operands = 0 : i64, tpu.core_type = #tpu.core_type<tc>, window_params = [{transform_indices = @transform_0, window_bounds = array<i64: 1, 384, 256>}, {transform_indices = @transform_1, window_bounds = array<i64: 1, 32, 256>}, {pipeline_mode = #tpu.pipeline_mode<synchronous>, transform_indices = @transform_2, window_bounds = array<i64: 128, 384>}, {pipeline_mode = #tpu.pipeline_mode<synchronous>, transform_indices = @transform_3, window_bounds = array<i64: 128, 1>}, {transform_indices = @transform_4, window_bounds = array<i64: 1, 32, 256>}, {transform_indices = @transform_5, window_bounds = array<i64: 1, 32, 256>}]} {
    %c0 = arith.constant 0 : index
    %c0_0 = arith.constant 0 : index
    %0 = vector.load %arg4[%c0, %c0_0] : memref<128x1xf32, #tpu.memory_space<vmem>>, vector<128x1xf32>
    %c0_1 = arith.constant 0 : index
    %c0_2 = arith.constant 0 : index
    %1 = vector.load %arg3[%c0_1, %c0_2] : memref<128x384xbf16, #tpu.memory_space<vmem>>, vector<128x384xbf16>
    %c0_3 = arith.constant 0 : index
    %c0_4 = arith.constant 0 : index
    %c0_5 = arith.constant 0 : index
    %2 = vector.load %arg1[%c0_3, %c0_4, %c0_5] : memref<1x384x256xbf16, #tpu.memory_space<vmem>>, vector<1x384x128xbf16>
    %3 = vector.shape_cast %2 : vector<1x384x128xbf16> to vector<384x128xbf16>
    %cst = arith.constant dense<0.000000e+00> : vector<128x128xf32>
    %4 = tpu.matmul %1, %3, %cst {dimension_numbers = #tpu.dot_dimension_numbers<[1], [0], [0], [1], [0, 0, 1, 1], [], []>} : vector<128x384xbf16>, vector<384x128xbf16>, vector<128x128xf32> -> vector<128x128xf32>
    %5 = vector.broadcast %0 : vector<128x1xf32> to vector<128x128xf32>
    %6 = arith.addf %4, %5 : vector<128x128xf32>
    %7 = vector.extract_strided_slice %6 {offsets = [0, 0], sizes = [96, 128], strides = [1, 1]} : vector<128x128xf32> to vector<96x128xf32>
    %cst_6 = arith.constant 5.000000e-01 : f32
    %8 = vector.broadcast %cst_6 : f32 to vector<96x128xf32>
    %9 = arith.mulf %8, %7 : vector<96x128xf32>
    %10 = math.tanh %9 : vector<96x128xf32>
    %cst_7 = arith.constant 5.000000e-01 : f32
    %11 = vector.broadcast %cst_7 : f32 to vector<96x128xf32>
    %12 = arith.mulf %11, %10 : vector<96x128xf32>
    %cst_8 = arith.constant 5.000000e-01 : f32
    %13 = vector.broadcast %cst_8 : f32 to vector<96x128xf32>
    %14 = arith.addf %12, %13 : vector<96x128xf32>
    %15 = vector.extract_strided_slice %6 {offsets = [96, 0], sizes = [32, 128], strides = [1, 1]} : vector<128x128xf32> to vector<32x128xf32>
    %16 = math.tanh %15 : vector<32x128xf32>
    %17 = vector.extract_strided_slice %14 {offsets = [0, 0], sizes = [32, 128], strides = [1, 1]} : vector<96x128xf32> to vector<32x128xf32>
    %18 = vector.extract_strided_slice %14 {offsets = [32, 0], sizes = [32, 128], strides = [1, 1]} : vector<96x128xf32> to vector<32x128xf32>
    %19 = vector.extract_strided_slice %14 {offsets = [64, 0], sizes = [32, 128], strides = [1, 1]} : vector<96x128xf32> to vector<32x128xf32>
    %c0_9 = arith.constant 0 : index
    %c0_10 = arith.constant 0 : index
    %c0_11 = arith.constant 0 : index
    %20 = vector.load %arg2[%c0_9, %c0_10, %c0_11] : memref<1x32x256xf32, #tpu.memory_space<vmem>>, vector<1x32x128xf32>
    %21 = vector.shape_cast %20 : vector<1x32x128xf32> to vector<32x128xf32>
    %22 = arith.mulf %18, %21 : vector<32x128xf32>
    %23 = arith.mulf %17, %16 : vector<32x128xf32>
    %24 = arith.addf %22, %23 : vector<32x128xf32>
    %25 = math.tanh %24 : vector<32x128xf32>
    %26 = arith.mulf %19, %25 : vector<32x128xf32>
    %c0_12 = arith.constant 0 : index
    %c0_13 = arith.constant 0 : index
    %c0_14 = arith.constant 0 : index
    %27 = vector.load %arg6[%c0_12, %c0_13, %c0_14] : memref<1x32x256xf32, #tpu.memory_space<vmem>>, vector<1x32x128xf32>
    %28 = vector.shape_cast %27 : vector<1x32x128xf32> to vector<32x128xf32>
    %29 = vector.shape_cast %24 : vector<32x128xf32> to vector<1x32x128xf32>
    tpu.vector_store %arg6[%c0_12, %c0_13, %c0_14], %29 {strides = array<i32>} : memref<1x32x256xf32, #tpu.memory_space<vmem>>, vector<1x32x128xf32>,
    %c0_15 = arith.constant 0 : index
    %c0_16 = arith.constant 0 : index
    %c0_17 = arith.constant 0 : index
    %30 = vector.load %arg5[%c0_15, %c0_16, %c0_17] : memref<1x32x256xf32, #tpu.memory_space<vmem>>, vector<1x32x128xf32>
    %31 = vector.shape_cast %30 : vector<1x32x128xf32> to vector<32x128xf32>
    %32 = vector.shape_cast %26 : vector<32x128xf32> to vector<1x32x128xf32>
    tpu.vector_store %arg5[%c0_15, %c0_16, %c0_17], %32 {strides = array<i32>} : memref<1x32x256xf32, #tpu.memory_space<vmem>>, vector<1x32x128xf32>,
    %c0_18 = arith.constant 0 : index
    %c0_19 = arith.constant 0 : index
    %33 = vector.load %arg3[%c0_18, %c0_19] : memref<128x384xbf16, #tpu.memory_space<vmem>>, vector<128x384xbf16>
    %c0_20 = arith.constant 0 : index
    %c0_21 = arith.constant 0 : index
    %c128 = arith.constant 128 : index
    %34 = vector.load %arg1[%c0_20, %c0_21, %c128] : memref<1x384x256xbf16, #tpu.memory_space<vmem>>, vector<1x384x128xbf16>
    %35 = vector.shape_cast %34 : vector<1x384x128xbf16> to vector<384x128xbf16>
    %cst_22 = arith.constant dense<0.000000e+00> : vector<128x128xf32>
    %36 = tpu.matmul %33, %35, %cst_22 {dimension_numbers = #tpu.dot_dimension_numbers<[1], [0], [0], [1], [0, 0, 1, 1], [], []>} : vector<128x384xbf16>, vector<384x128xbf16>, vector<128x128xf32> -> vector<128x128xf32>
    %37 = vector.broadcast %0 : vector<128x1xf32> to vector<128x128xf32>
    %38 = arith.addf %36, %37 : vector<128x128xf32>
    %39 = vector.extract_strided_slice %38 {offsets = [0, 0], sizes = [96, 128], strides = [1, 1]} : vector<128x128xf32> to vector<96x128xf32>
    %cst_23 = arith.constant 5.000000e-01 : f32
    %40 = vector.broadcast %cst_23 : f32 to vector<96x128xf32>
    %41 = arith.mulf %40, %39 : vector<96x128xf32>
    %42 = math.tanh %41 : vector<96x128xf32>
    %cst_24 = arith.constant 5.000000e-01 : f32
    %43 = vector.broadcast %cst_24 : f32 to vector<96x128xf32>
    %44 = arith.mulf %43, %42 : vector<96x128xf32>
    %cst_25 = arith.constant 5.000000e-01 : f32
    %45 = vector.broadcast %cst_25 : f32 to vector<96x128xf32>
    %46 = arith.addf %44, %45 : vector<96x128xf32>
    %47 = vector.extract_strided_slice %38 {offsets = [96, 0], sizes = [32, 128], strides = [1, 1]} : vector<128x128xf32> to vector<32x128xf32>
    %48 = math.tanh %47 : vector<32x128xf32>
    %49 = vector.extract_strided_slice %46 {offsets = [0, 0], sizes = [32, 128], strides = [1, 1]} : vector<96x128xf32> to vector<32x128xf32>
    %50 = vector.extract_strided_slice %46 {offsets = [32, 0], sizes = [32, 128], strides = [1, 1]} : vector<96x128xf32> to vector<32x128xf32>
    %51 = vector.extract_strided_slice %46 {offsets = [64, 0], sizes = [32, 128], strides = [1, 1]} : vector<96x128xf32> to vector<32x128xf32>
    %c0_26 = arith.constant 0 : index
    %c0_27 = arith.constant 0 : index
    %c128_28 = arith.constant 128 : index
    %52 = vector.load %arg2[%c0_26, %c0_27, %c128_28] : memref<1x32x256xf32, #tpu.memory_space<vmem>>, vector<1x32x128xf32>
    %53 = vector.shape_cast %52 : vector<1x32x128xf32> to vector<32x128xf32>
    %54 = arith.mulf %50, %53 : vector<32x128xf32>
    %55 = arith.mulf %49, %48 : vector<32x128xf32>
    %56 = arith.addf %54, %55 : vector<32x128xf32>
    %57 = math.tanh %56 : vector<32x128xf32>
    %58 = arith.mulf %51, %57 : vector<32x128xf32>
    %c0_29 = arith.constant 0 : index
    %c0_30 = arith.constant 0 : index
    %c128_31 = arith.constant 128 : index
    %59 = vector.load %arg6[%c0_29, %c0_30, %c128_31] : memref<1x32x256xf32, #tpu.memory_space<vmem>>, vector<1x32x128xf32>
    %60 = vector.shape_cast %59 : vector<1x32x128xf32> to vector<32x128xf32>
    %61 = vector.shape_cast %56 : vector<32x128xf32> to vector<1x32x128xf32>
    tpu.vector_store %arg6[%c0_29, %c0_30, %c128_31], %61 {strides = array<i32>} : memref<1x32x256xf32, #tpu.memory_space<vmem>>, vector<1x32x128xf32>,
    %c0_32 = arith.constant 0 : index
    %c0_33 = arith.constant 0 : index
    %c128_34 = arith.constant 128 : index
    %62 = vector.load %arg5[%c0_32, %c0_33, %c128_34] : memref<1x32x256xf32, #tpu.memory_space<vmem>>, vector<1x32x128xf32>
    %63 = vector.shape_cast %62 : vector<1x32x128xf32> to vector<32x128xf32>
    %64 = vector.shape_cast %58 : vector<32x128xf32> to vector<1x32x128xf32>
    tpu.vector_store %arg5[%c0_32, %c0_33, %c128_34], %64 {strides = array<i32>} : memref<1x32x256xf32, #tpu.memory_space<vmem>>, vector<1x32x128xf32>,
    return
  }
  func.func @transform_0(%arg0: i32) -> (i32, i32, i32) {
    %c0_i32 = arith.constant 0 : i32
    %c0_i32_0 = arith.constant 0 : i32
    %c0_i32_1 = arith.constant 0 : i32
    return %arg0, %c0_i32, %c0_i32_0 : i32, i32, i32
  }
  func.func @transform_1(%arg0: i32) -> (i32, i32, i32) {
    %c0_i32 = arith.constant 0 : i32
    %c0_i32_0 = arith.constant 0 : i32
    %c0_i32_1 = arith.constant 0 : i32
    return %arg0, %c0_i32, %c0_i32_0 : i32, i32, i32
  }
  func.func @transform_2(%arg0: i32) -> (i32, i32) {
    %c0_i32 = arith.constant 0 : i32
    %c0_i32_0 = arith.constant 0 : i32
    %c0_i32_1 = arith.constant 0 : i32
    return %c0_i32, %c0_i32_0 : i32, i32
  }
  func.func @transform_3(%arg0: i32) -> (i32, i32) {
    %c0_i32 = arith.constant 0 : i32
    %c0_i32_0 = arith.constant 0 : i32
    %c0_i32_1 = arith.constant 0 : i32
    return %c0_i32, %c0_i32_0 : i32, i32
  }
  func.func @transform_4(%arg0: i32) -> (i32, i32, i32) {
    %c0_i32 = arith.constant 0 : i32
    %c0_i32_0 = arith.constant 0 : i32
    %c0_i32_1 = arith.constant 0 : i32
    return %arg0, %c0_i32, %c0_i32_0 : i32, i32, i32
  }
  func.func @transform_5(%arg0: i32) -> (i32, i32, i32) {
    %c0_i32 = arith.constant 0 : i32
    %c0_i32_0 = arith.constant 0 : i32
    %c0_i32_1 = arith.constant 0 : i32
    return %arg0, %c0_i32, %c0_i32_0 : i32, i32, i32
  }
}

</mosaic_0001>

<bundles_post_ra>
// kernel: tpu_custom_call.1
= control target key start
LH: loop header
LB: loop body
LE: loop exit
PB: predicated region body
PF: predicated region fallthrough
CT: control target
= control target key end

     0   :  { %11 = vsyncpa [#allocation3], 0  ;;  %s3169_s0 = inlined_call_operand.hbm [shape: bf16[2,384,256], index: 0, kind: input, shape index: {}]   ;;  %s3170_s1 = inlined_call_operand.vmem [shape: f32[2,32,256], index: 1, kind: input, shape index: {}]   ;;  %s3171_s2 = inlined_call_operand.hbm [shape: bf16[128,384], index: 2, kind: input, shape index: {}]   ;;  %s3172_s3 = inlined_call_operand.vmem [shape: f32[128,1], index: 3, kind: input, shape index: {}]   ;;  %s3173_s4 = inlined_call_operand.hbm [shape: f32[2,32,256], index: 4, kind: output, shape index: {0}]   ;;  %s3174_s5 = inlined_call_operand.hbm [shape: f32[2,32,256], index: 5, kind: output, shape index: {1}]  }
   0x1   :  { %13 = vsyncpa [#allocation3 + $0x1], 0 }
   0x2   :  { %14 = vsyncpa [#allocation6], 0 }
   0x3   :  { %15 = vsyncpa [#allocation4], 0 }
   0x4   :  { %17 = vsyncpa [#allocation4 + $0x1], 0 }
   0x5   :  { %18 = vsyncpa [#allocation9], 0 }
   0x6   :  { %20 = vsyncpa [#allocation9 + $0x1], 0  ;;  %s2595_s18 = smov 0   ;;  %s2597_s19 = smov 0  }
   0x7   :  { %s2599_s20 = smov 0   ;;  %s2601_s21 = smov 0  }
   0x8 LB: > { %s2616_s22 = sadd.s32 4294967295, %s2552_s21   ;;  %s1808_s23 = sadd.s32 4294967294, %s2552_s21   ;;  %s2552_s21 = sphi %s2601_s21, %s3194_s21   ;;  %s2548_s20 = sphi %s2599_s20, %s3193_s20   ;;  %s2544_s19 = sphi %s2597_s19, %s3192_s19   ;;  %s2540_s18 = sphi %s2595_s18, %s3191_s18  }
   0x9   : > { %p46_p0 = scmp.ne.s32.totalorder %s2544_s19, %s2540_s18  ;;  %p3175_p1 = scmp.eq.s32.totalorder %s2616_s22, 0 }
   0xa   : > { %p144_p3 = scmp.eq.s32.totalorder %s1808_s23, 1  ;;  %p1809_p5 = scmp.ge.s32.totalorder %s2552_s21, 1 }
   0xb   : > { %p2625_p4 = por %p3175_p1, %p46_p0  ;;  %p177_p7 = scmp.lt.s32.totalorder %s2552_s21, 3 }
   0xc   : > { %p2630_p6 = por %p144_p3, %p46_p0  ;;  %s2554_s27 = smov [#allocation5]  }
   0xd   : > { %s3178_s24 = scalar_select %p2625_p4, 1, 0 }
   0xe   : > { %s3179_s25 = scalar_select %p2630_p6, 1, 0 }
   0xf   : > { %p2635_p8 = pnand %p1809_p5, %p177_p7  ;;  %s189_s28 = sshll.u32 %s2554_s27, 4  ;;  %s2639_s28 = int_to_ptr.vmem [resolvable:$true] %s189_s28 }
  0x10   : > { %s2651_s30 = sadd.s32 1, %s2552_s21   ;;  %s33_s6 = sadd.s32 1, %s2548_s20 }
  0x11   : > { %s3180_s26 = scalar_select %p2635_p8, 1, 0 }
  0x12   : > { %p2163_p9 = pneg %p2635_p8  ;;  %s30_s7 = ssub.s32 %s2552_s21, %s2651_s30 }
  0x13   : > { %s2392_s10 = scalar_lea.hbm %s3171_s2, 3072 }
  0x14   : > { %p2646_p11 = pnand %p2163_p9, %p3175_p1  ;;  %p2393_p12 = scmp.ne.s32.totalorder %s3171_s2, %s2392_s10 }
  0x15   : > { %p2399_p5 = scmp.lt.u32.totalorder %s2392_s10, %s3171_s2 }
  0x16   : > { %p2394_p13 = pneg %p2646_p11 }
  0x18   : > { %p2395_p0 = pnand %p2394_p13, %p2393_p12 }
  0x1a   : > { %p2396_p3 = pneg %p2395_p0 }
  0x1c   : > { %p2401_p7 = pnand %p2399_p5, %p2396_p3 }
  0x1e   : > { %2404 = shalt.err (!%p2401_p7)
}
  0x1f   : > { %s2405_s15 = scalar_lea.vmem %s2639_s28, 3072  ;;  %p2413_p2 = scmp.lt.s32.totalorder %s2639_s28, %s2639_s28 }
  0x20   : > { %p2406_p9 = scmp.ne.s32.totalorder %s2639_s28, %s2405_s15  ;;  %p2414_p6 = scmp.lt.s32.totalorder %s2405_s15, %s2405_s15 }
  0x22   : > { %p2408_p10 = pnand %p2406_p9, %p2394_p13  ;;  %p2415_p4 = por %p2414_p6, %p2413_p2 }
  0x24   : > { %p2409_p1 = pneg %p2408_p10 }
  0x26   : > { %p2416_p8 = pnand %p2415_p4, %p2409_p1 }
  0x28   : > { %2419 = shalt.err (!%p2416_p8)
}
  0x29   : > { %s2555_s16 = smov 192   ;;  %s2556_s17 = smov 12  }
  0x2a   : > { %2166 = dma.hbm_to_vmem [thread:$0]  (!%p2646_p11), %s3171_s2, 3072, %s2639_s28, [#allocation6], %s2555_s16, %s2555_s16, %s2556_s17  }
  0x2b   : > { %p31_p2 = scmp.eq.s32.totalorder %s30_s7, 0  ;;  %p40_p1 = scmp.ne.s32.totalorder %s2548_s20, %s2544_s19 }
  0x2c   : > { %p41_p4 = scmp.eq.s32.totalorder %s2552_s21, 0  ;;  %p2179_p6 = scmp.lt.s32.totalorder %s2552_s21, 2 }
  0x2d   : > { %s2682_s8 = scalar_select %p31_p2, %s2548_s20, %s33_s6  }
  0x2e   : > { %p42_p8 = por %p41_p4, %p40_p1  ;;  %p3182_p10 = scmp.eq.s32.totalorder %s2616_s22, 1 }
  0x2f   : > { %s206_s10 = sand.u32 1, %s2548_s20   ;;  %s2151_s11 = smul.u32 6144, %s2552_s21 }
  0x30   : > { %p2686_p12 = por %p3182_p10, %p40_p1  ;;  %s2150_s12 = smul.u32 384, %s206_s10 }
  0x31   : > { %s2695_s14 = scalar_lea.hbm %s3169_s0, %s2151_s11  ;;  %p2697_p11 = pnand %p2179_p6, %p42_p8 }
  0x32   : > { %s210_s6 = scalar_lea.vmem [#allocation2], %s2150_s12  ;;  %s2703_s15 = scalar_lea.sflag [#allocation3], %s206_s10 }
  0x33   : > { %s217_s7 = sshll.u32 %s210_s6, 4  ;;  %s2420_s16 = scalar_lea.hbm %s2695_s14, 6144  ;;  %s2701_s7 = int_to_ptr.vmem [resolvable:$true] %s217_s7 }
  0x34   : > { %p2421_p13 = scmp.ne.s32.totalorder %s2695_s14, %s2420_s16  ;;  %p2422_p0 = pneg %p2697_p11 }
  0x35   : > { %s2425_s27 = scalar_lea.hbm %s3169_s0, 12288  ;;  %p2426_p7 = scmp.lt.u32.totalorder %s2695_s14, %s3169_s0 }
  0x36   : > { %p2423_p3 = pnand %p2422_p0, %p2421_p13  ;;  %p2427_p9 = scmp.lt.u32.totalorder %s2425_s27, %s2420_s16 }
  0x37   : > { %p2429_p1 = scmp.lt.u32.totalorder %s2420_s16, %s2695_s14 }
  0x38   : > { %p2424_p5 = pneg %p2423_p3  ;;  %p2428_p2 = por %p2427_p9, %p2426_p7 }
  0x3a   : > { %p2430_p4 = por %p2429_p1, %p2428_p2 }
  0x3c   : > { %p2431_p6 = pnand %p2430_p4, %p2424_p5 }
  0x3e   : > { %2434 = shalt.err (!%p2431_p6)
}
  0x3f   : > { %s2435_s10 = scalar_lea.vmem %s2701_s7, 6144  ;;  %s2557_s12 = smov [#allocation2]  }
  0x40   : > { %p2436_p8 = scmp.ne.s32.totalorder %s2701_s7, %s2435_s10  ;;  %s2440_s13 = sshll.u32 %s2557_s12, 4  ;;  %s2441_s13 = int_to_ptr.vmem [resolvable:$false] %s2440_s13 }
  0x41   : > { %s2442_s6 = scalar_lea.vmem %s2441_s13, 12288  ;;  %p2443_p3 = scmp.lt.s32.totalorder %s2701_s7, %s2441_s13 }
  0x42   : > { %p2438_p10 = pnand %p2436_p8, %p2422_p0  ;;  %p2444_p7 = scmp.lt.s32.totalorder %s2442_s6, %s2435_s10 }
  0x44   : > { %p2439_p13 = pneg %p2438_p10  ;;  %p2445_p9 = por %p2444_p7, %p2443_p3 }
  0x46   : > { %p2446_p2 = pnand %p2445_p9, %p2439_p13 }
  0x48   : > { %2449 = shalt.err (!%p2446_p2)
}
  0x49   : > { %s2558_s16 = smov 128   ;;  %s2559_s17 = smov 8  }
  0x4a   : > { %2170 = dma.hbm_to_vmem [thread:$0]  (!%p2697_p11), %s2695_s14, 6144, %s2701_s7, %s2703_s15, %s2558_s16, %s2558_s16, %s2559_s17  }
  0x4b   : > { %p3185_p0 = scmp.ne.s32.totalorder %s3180_s26, 0 }
  0x4c   : > { %s2734_s23 = sand.u32 (!%p3185_p0), 1, %s2544_s19   ;;  %p3186_p5 = scmp.ne.s32.totalorder (!%p3185_p0), %s3178_s24, 0 }
  0x4d   : > { %237 = sbr.rel (%p3185_p0) target bundleno = 486 (0x1e6), region = 36  ;;  %s240_s11 = scalar_lea.sflag (!%p3185_p0), [#allocation3], %s2734_s23 }
  0x4e   : > { %s2152_s27 = smul.u32 (!%p3185_p0), 384, %s2734_s23 }
  0x50   : > { %s2738_s29 = scalar_lea.vmem (!%p3185_p0), [#allocation2], %s2152_s27 }
  0x54   : > { %2523 = dma.done.wait (%p3186_p5), %s240_s11, 6144  }
  0x55   : > { %2525 = vsyncadd (%p3186_p5), %s240_s11, 4294961152  ;;  %p3187_p11 = scmp.eq.s32.totalorder %s2616_s22, 0 }
  0x57   : > { %2527 = dma.done.wait (%p3187_p11), [#allocation6], 3072   ;;  %p3188_p1 = pmov %p3187_p11 }
  0x58   : > { %v2560_v0 = vmov 0   ;;  %v2224_v1 = vld [vmem:[%s2738_s29 + $0x80] ss:$8 sps:$4 sm:$0xff]   ;;  %v2227_v4 = vld [vmem:[%s2738_s29 + $0x90] ss:$8 sps:$4 sm:$0xff]   ;;  %p284_p4 = scmp.lt.s32.totalorder %s2616_s22, 1 }
  0x59   : > { %2529 = vsyncadd (%p3188_p1), [#allocation6], 4294964224  ;;  %2222 = vset.pattern.permute.xlu0 %v2560_v0  ;;  %2223 = vset.pattern.permute.xlu1 %v2560_v0  ;;  %v2225_v2 = vld [vmem:[%s2738_s29 + $0x100] ss:$8 sps:$4 sm:$0xff]   ;;  %v2228_v5 = vld [vmem:[%s2738_s29 + $0x110] ss:$8 sps:$4 sm:$0xff]  }
  0x5a   : > { %1926 = vmatprep.subr.bf16.mxu0 %v2224_v1  ;;  %v2226_v3 = vld [vmem:[%s2738_s29] ss:$8 sps:$4 sm:$0xff]   ;;  %2086 = vmatprep.subr.bf16.mxu1 %v2225_v2  ;;  %v2229_v6 = vld [vmem:[%s2738_s29 + $0x10] ss:$8 sps:$4 sm:$0xff]   ;;  %v2253_v29 = vld [vmem:[%s2738_s29 + $0x84] ss:$8 sps:$4 sm:$0xff]  }
  0x5b   : > { %1927 = vmatpush3.bf16.msra.mxu0 %v2226_v3  ;;  %2087 = vmatpush3.bf16.msra.mxu1 %v2225_v2  ;;  %v2230_v7 = vld [vmem:[%s2738_s29 + $0xa0] ss:$8 sps:$4 sm:$0xff]   ;;  %v2233_v10 = vld [vmem:[%s2738_s29 + $0xb0] ss:$8 sps:$4 sm:$0xff]   ;;  %v2254_v30 = vld [vmem:[%s2738_s29 + $0x4] ss:$8 sps:$4 sm:$0xff]  }
  0x5c   : > { %1928 = vmatprep.subr.bf16.mxu0 %v2227_v4  ;;  %2088 = vmatprep.subr.bf16.mxu1 %v2228_v5  ;;  %v2231_v8 = vld [vmem:[%s2738_s29 + $0x120] ss:$8 sps:$4 sm:$0xff]   ;;  %v2234_v11 = vld [vmem:[%s2738_s29 + $0x130] ss:$8 sps:$4 sm:$0xff]   ;;  %v2256_v31 = vld [vmem:[%s2738_s29 + $0x104] ss:$8 sps:$4 sm:$0xff]  }
  0x5d   : > { %v2232_v9 = vld [vmem:[%s2738_s29 + $0x20] ss:$8 sps:$4 sm:$0xff]   ;;  %v2235_v12 = vld [vmem:[%s2738_s29 + $0x30] ss:$8 sps:$4 sm:$0xff]   ;;  %v2255_v32 = vld [vmem:[%s2738_s29 + $0x94] ss:$8 sps:$4 sm:$0xff]  }
  0x5e   : > { %v2236_v13 = vld [vmem:[%s2738_s29 + $0xc0] ss:$8 sps:$4 sm:$0xff]   ;;  %v2239_v16 = vld [vmem:[%s2738_s29 + $0xd0] ss:$8 sps:$4 sm:$0xff]   ;;  %v2257_v35 = vld [vmem:[%s2738_s29 + $0x14] ss:$8 sps:$4 sm:$0xff]  }
  0x5f   : > { %1929 = vmatpush3.bf16.msra.mxu0 %v2229_v6  ;;  %2089 = vmatpush3.bf16.msra.mxu1 %v2228_v5  ;;  %v2237_v14 = vld [vmem:[%s2738_s29 + $0x140] ss:$8 sps:$4 sm:$0xff]   ;;  %v2240_v17 = vld [vmem:[%s2738_s29 + $0x150] ss:$8 sps:$4 sm:$0xff]   ;;  %v2263_v38 = vld [vmem:[%s2738_s29 + $0xa4] ss:$8 sps:$4 sm:$0xff]  }
  0x60   : > { %1930 = vmatprep.subr.bf16.mxu0 %v2230_v7  ;;  %2090 = vmatprep.subr.bf16.mxu1 %v2231_v8  ;;  %v2238_v15 = vld [vmem:[%s2738_s29 + $0x40] ss:$8 sps:$4 sm:$0xff]   ;;  %v2241_v18 = vld [vmem:[%s2738_s29 + $0x50] ss:$8 sps:$4 sm:$0xff]   ;;  %v2264_v39 = vld [vmem:[%s2738_s29 + $0x24] ss:$8 sps:$4 sm:$0xff]  }
  0x61   : > { %v2242_v19 = vld [vmem:[%s2738_s29 + $0xe0] ss:$8 sps:$4 sm:$0xff]   ;;  %v2245_v22 = vld [vmem:[%s2738_s29 + $0xf0] ss:$8 sps:$4 sm:$0xff]   ;;  %v2266_v40 = vld [vmem:[%s2738_s29 + $0x114] ss:$8 sps:$4 sm:$0xff]  }
  0x62   : > { %v2243_v20 = vld [vmem:[%s2738_s29 + $0x160] ss:$8 sps:$4 sm:$0xff]   ;;  %v2246_v23 = vld [vmem:[%s2738_s29 + $0x170] ss:$8 sps:$4 sm:$0xff]   ;;  %v2265_v41 = vld [vmem:[%s2738_s29 + $0xb4] ss:$8 sps:$4 sm:$0xff]  }
  0x63   : > { %1931 = vmatpush3.bf16.msra.mxu0 %v2232_v9  ;;  %2091 = vmatpush3.bf16.msra.mxu1 %v2231_v8  ;;  %v2244_v21 = vld [vmem:[%s2738_s29 + $0x60] ss:$8 sps:$4 sm:$0xff]   ;;  %v2771_v24 = vld [vmem:[#allocation5 + $0x4] ss:$12 sps:$4 sm:$0xff]   ;;  %v2267_v44 = vld [vmem:[%s2738_s29 + $0x34] ss:$8 sps:$4 sm:$0xff]  }
  0x64   : > { %1932 = vmatprep.subr.bf16.mxu0 %v2233_v10  ;;  %2092 = vmatprep.subr.bf16.mxu1 %v2234_v11  ;;  %v2251_v25 = vld [vmem:[#allocation5 + $0x8] ss:$12 sps:$4 sm:$0xff]   ;;  %v2247_v26 = vld [vmem:[%s2738_s29 + $0x70] ss:$8 sps:$4 sm:$0xff]   ;;  %v2775_v27 = vld [vmem:[#allocation5] ss:$12 sps:$4 sm:$0xff]  }
  0x65   : > { %770 = vmatprep.mubr.bf16.mxu0 %v2771_v24  ;;  %v2252_v28 = vld [vmem:[#allocation5 + $0x20] ss:$12 sps:$4 sm:$0xff]   ;;  %2102 = vmatprep.mubr.bf16.mxu1 %v2251_v25  ;;  %v2781_v33 = vld [vmem:[#allocation5 + $0x1c] ss:$12 sps:$4 sm:$0xff]   ;;  %v2260_v34 = vld [vmem:[#allocation5 + $0x38] ss:$12 sps:$4 sm:$0xff]  }
  0x66   : > { %v2786_v36 = vld [vmem:[#allocation5 + $0x18] ss:$12 sps:$4 sm:$0xff]   ;;  %v2262_v37 = vld [vmem:[#allocation5 + $0x50] ss:$12 sps:$4 sm:$0xff]   ;;  %v2792_v42 = vld [vmem:[#allocation5 + $0x34] ss:$12 sps:$4 sm:$0xff]  }
  0x67   : > { %1933 = vmatpush3.bf16.msra.mxu0 %v2235_v12  ;;  %2093 = vmatpush3.bf16.msra.mxu1 %v2234_v11  ;;  %v2270_v43 = vld [vmem:[#allocation5 + $0x68] ss:$12 sps:$4 sm:$0xff]   ;;  %v2797_v45 = vld [vmem:[#allocation5 + $0x30] ss:$12 sps:$4 sm:$0xff]   ;;  %v2272_v46 = vld [vmem:[#allocation5 + $0x80] ss:$12 sps:$4 sm:$0xff]  }
  0x68   : > { %1934 = vmatprep.subr.bf16.mxu0 %v2236_v13  ;;  %2094 = vmatprep.subr.bf16.mxu1 %v2237_v14  ;;  %v2273_v47 = vld [vmem:[%s2738_s29 + $0xc4] ss:$8 sps:$4 sm:$0xff]   ;;  %v2275_v50 = vld [vmem:[%s2738_s29 + $0xd4] ss:$8 sps:$4 sm:$0xff]   ;;  %s2973_s14 = scalar_select %p284_p4, %s2616_s22, 1 }
  0x69   : > { %v2274_v48 = vld [vmem:[%s2738_s29 + $0x44] ss:$8 sps:$4 sm:$0xff]   ;;  %v2277_v53 = vld [vmem:[%s2738_s29 + $0x54] ss:$8 sps:$4 sm:$0xff]   ;;  %s1815_s12 = sshll.u32 %s2734_s23, 6  ;;  %s1924_s16 = sshll.u32 %s2616_s22, 10 }
  0x6a   : > { %v2276_v49 = vld [vmem:[%s2738_s29 + $0x124] ss:$8 sps:$4 sm:$0xff]   ;;  %v2808_v54 = vld [vmem:[#allocation5 + $0x48] ss:$12 sps:$4 sm:$0xff]   ;;  %v2282_v56 = vld [vmem:[#allocation5 + $0xb0] ss:$12 sps:$4 sm:$0xff]  }
  0x6b   : > { %1935 = vmatpush3.bf16.msra.mxu0 %v2238_v15  ;;  %2095 = vmatpush3.bf16.msra.mxu1 %v2237_v14  ;;  %v2803_v51 = vld [vmem:[#allocation5 + $0x4c] ss:$12 sps:$4 sm:$0xff]   ;;  %v2286_v58 = vld [vmem:[%s2738_s29 + $0x134] ss:$8 sps:$4 sm:$0xff]   ;;  %v2814_v60 = vld [vmem:[#allocation5 + $0x64] ss:$12 sps:$4 sm:$0xff]  }
  0x6c   : > { %1936 = vmatprep.subr.bf16.mxu0 %v2239_v16  ;;  %2096 = vmatprep.subr.bf16.mxu1 %v2240_v17  ;;  %v2280_v52 = vld [vmem:[#allocation5 + $0x98] ss:$12 sps:$4 sm:$0xff]   ;;  %v2285_v59 = vld [vmem:[%s2738_s29 + $0xf4] ss:$8 sps:$4 sm:$0xff]   ;;  %v2290_v0 = vld [vmem:[#allocation5 + $0x60] ss:$12 sps:$4 sm:$0xff]  }
  0x6d   : > { %v2283_v55 = vld [vmem:[%s2738_s29 + $0xe4] ss:$8 sps:$4 sm:$0xff]   ;;  %v2287_v62 = vld [vmem:[%s2738_s29 + $0x74] ss:$8 sps:$4 sm:$0xff]   ;;  %s1923_s28 = sshll.u32 %s2973_s14, 6  ;;  %s3020_s13 = scalar_lea.vmem [#allocation8], %s1815_s12 }
  0x6e   : > { %v2284_v57 = vld [vmem:[%s2738_s29 + $0x64] ss:$8 sps:$4 sm:$0xff]   ;;  %v2295_v63 = vld [vmem:[%s2738_s29 + $0x154] ss:$8 sps:$4 sm:$0xff]   ;;  %s2985_s10 = scalar_lea.vmem %s3170_s1, %s1923_s28  ;;  %s3049_s6 = scalar_lea.vmem [#allocation7], %s1815_s12 }
  0x6f   : > { %1937 = vmatpush3.bf16.msra.mxu0 %v2241_v18  ;;  %2097 = vmatpush3.bf16.msra.mxu1 %v2240_v17  ;;  %v2291_v61 = vld [vmem:[%s2738_s29 + $0x144] ss:$8 sps:$4 sm:$0xff]   ;;  %v2292_v1 = vld [vmem:[#allocation5 + $0x7c] ss:$12 sps:$4 sm:$0xff]   ;;  %v2296_v5 = vld [vmem:[#allocation5 + $0x94] ss:$12 sps:$4 sm:$0xff]  }
  0x70   : > { %1938 = vmatprep.subr.bf16.mxu0 %v2242_v19  ;;  %2098 = vmatprep.subr.bf16.mxu1 %v2243_v20  ;;  %v2299_v2 = vld [vmem:[%s2738_s29 + $0x164] ss:$8 sps:$4 sm:$0xff]   ;;  %v2303_v3 = vld [vmem:[%s2738_s29 + $0x174] ss:$8 sps:$4 sm:$0xff]   ;;  %s1681_s17 = sshll.u32 %s3020_s13, 4  ;;  %s3078_s29 = scalar_lea.hbm %s3174_s5, %s1924_s16  ;;  %s3080_s17 = int_to_ptr.vmem [resolvable:$true] %s1681_s17 }
  0x71   : > { %v2294_v4 = vld [vmem:[#allocation5 + $0x78] ss:$12 sps:$4 sm:$0xff]   ;;  %v291_v7 = vld [vmem:[%s3172_s3 + $0x8] sm:$0xff]  ;;  %v292_v8 = vld [vmem:[%s3172_s3 + $0x10] sm:$0xff]  ;;  %s1652_s24 = scalar_lea.sflag [#allocation9], %s2734_s23  ;;  %s2450_s26 = scalar_lea.vmem %s3080_s17, 1024 }
  0x72   : > { %v290_v6 = vld [vmem:[%s3172_s3] sm:$0xff]  ;;  %398 = vperm.xlu1 %2223, %v292_v8   ;;  %v2298_v10 = vld [vmem:[#allocation5 + $0x90] ss:$12 sps:$4 sm:$0xff]   ;;  %v2300_v12 = vld [vmem:[#allocation5 + $0xac] ss:$12 sps:$4 sm:$0xff]   ;;  %p2451_p6 = scmp.ne.s32.totalorder %s3080_s17, %s2450_s26  ;;  %s2561_s14 = smov [#allocation8]  }
  0x73   : > { %1939 = vmatpush3.bf16.msra.mxu0 %v2244_v21  ;;  %2099 = vmatpush3.bf16.msra.mxu1 %v2243_v20  ;;  %v294_v9 = vld [vmem:[%s3172_s3 + $0x20] sm:$0xff]  ;;  %v293_v11 = vld [vmem:[%s3172_s3 + $0x18] sm:$0xff]  ;;  %v296_v13 = vld [vmem:[%s3172_s3 + $0x30] sm:$0xff]  ;;  %s2454_s28 = sshll.u32 %s2561_s14, 4  ;;  %s2455_s28 = int_to_ptr.vmem [resolvable:$false] %s2454_s28 }
  0x74   : > { %1940 = vmatprep.subr.bf16.mxu0 %v2245_v22  ;;  %2100 = vmatprep.subr.bf16.mxu1 %v2246_v23  ;;  %v295_v14 = vld [vmem:[%s3172_s3 + $0x28] sm:$0xff]  ;;  %v302_v15 = vld [vmem:[%s3172_s3 + $0x60] sm:$0xff]  ;;  %v297_v17 = vld [vmem:[%s3172_s3 + $0x38] sm:$0xff]  ;;  %p2452_p8 = pnand %p2451_p6, %p2686_p12  ;;  %s2456_s7 = scalar_lea.vmem %s2455_s28, 2048 }
  0x75   : > { %388 = vperm.xlu0 %2222, %v290_v6   ;;  %v2302_v16 = vld [vmem:[#allocation5 + $0xa8] ss:$12 sps:$4 sm:$0xff]   ;;  %v298_v21 = vld [vmem:[%s3172_s3 + $0x40] sm:$0xff]  ;;  %p2457_p13 = scmp.lt.s32.totalorder %s3080_s17, %s2455_s28  ;;  %p2458_p3 = scmp.lt.s32.totalorder %s2456_s7, %s2450_s26 }
  0x76   : > { %403 = vperm.xlu1 %2223, %v293_v11   ;;  %v2304_v18 = vld [vmem:[#allocation5 + $0x8] ss:$12 sps:$4 sm:$0xff]   ;;  %v2305_v22 = vld [vmem:[#allocation5 + $0x20] ss:$12 sps:$4 sm:$0xff]   ;;  %p2453_p10 = pneg %p2452_p8 }
  0x77   : > { %1941 = vmatpush3.bf16.msra.mxu0 %v2247_v26  ;;  %2101 = vmatpush3.bf16.msra.mxu1 %v2246_v23  ;;  %v304_v19 = vld [vmem:[%s3172_s3 + $0x70] sm:$0xff]  ;;  %v303_v20 = vld [vmem:[%s3172_s3 + $0x68] sm:$0xff]  ;;  %v305_v23 = vld [vmem:[%s3172_s3 + $0x78] sm:$0xff]  ;;  %p2459_p7 = por %p2458_p3, %p2457_p13 }
  0x78   : > { %2006 = vmatprep.subr.bf16.mxu1 %v2253_v29  ;;  %2118 = vmatprep.subr.bf16.mxu0 %v2256_v31  ;;  %v300_v25 = vld [vmem:[%s3172_s3 + $0x50] sm:$0xff]  ;;  %v299_v26 = vld [vmem:[%s3172_s3 + $0x48] sm:$0xff] }
  0x79   : > { %393 = vperm.xlu0 %2222, %v291_v7   ;;  %v2308_v29 = vld [vmem:[#allocation5 + $0x68] ss:$12 sps:$4 sm:$0xff]   ;;  %p2460_p9 = pnand %p2459_p7, %p2453_p10 }
  0x7a   : > { %771 = vmatmul.mubr.bf16.vlgmr.msra.gmra.mrb[0].mxu0 %v2775_v27  ;;  %2103 = vmatmul.mubr.bf16.vlgmr.msra.gmra.mrb[0].mxu1 %v2252_v28  ;;  %v301_v28 = vld [vmem:[%s3172_s3 + $0x58] sm:$0xff] }
  0x7b   : > { %2007 = vmatpush3.bf16.msra.mxu1 %v2254_v30  ;;  %2119 = vmatpush3.bf16.msra.mxu0 %v2256_v31  ;;  %v2309_v30 = vld [vmem:[#allocation5 + $0x80] ss:$12 sps:$4 sm:$0xff]   ;;  %v2310_v31 = vld [vmem:[#allocation5 + $0x98] ss:$12 sps:$4 sm:$0xff]  }
  0x7c   : > { %2008 = vmatprep.subr.bf16.mxu1 %v2255_v32  ;;  %778 = vmatprep.mubr.bf16.mxu0 %v2781_v33  ;;  %v2311_v32 = vld [vmem:[#allocation5 + $0xb0] ss:$12 sps:$4 sm:$0xff]  }
  0x7d   : > { %2106 = vmatprep.mubr.bf16.mxu1 %v2260_v34  ;;  %2120 = vmatprep.subr.bf16.mxu0 %v2266_v40 }
  0x7e   : > { %408 = vperm.xlu0 %2222, %v294_v9   ;;  %413 = vperm.xlu1 %2223, %v295_v14  }
  0x7f   : > { %2009 = vmatpush3.bf16.msra.mxu1 %v2257_v35  ;;  %2121 = vmatpush3.bf16.msra.mxu0 %v2266_v40 }
  0x80   : > { %2010 = vmatprep.subr.bf16.mxu1 %v2263_v38  ;;  %2122 = vmatprep.subr.bf16.mxu0 %v2276_v49 }
  0x82   : > { %779 = vmatmul.mubr.bf16.gmra.mrb[4].mxu0 %v2786_v36  ;;  %2107 = vmatmul.mubr.bf16.gmra.mrb[4].mxu1 %v2262_v37 }
  0x83   : > { %2011 = vmatpush3.bf16.msra.mxu1 %v2264_v39  ;;  %786 = vmatprep.mubr.bf16.mxu0 %v2792_v42 }
  0x84   : > { %2012 = vmatprep.subr.bf16.mxu1 %v2265_v41  ;;  %2110 = vmatprep.mubr.bf16.mxu1 %v2270_v43 }
  0x85   : > { %2123 = vmatpush3.bf16.msra.mxu0 %v2276_v49  ;;  %418 = vperm.xlu0 %2222, %v296_v13  }
  0x86   : > { %2124 = vmatprep.subr.bf16.mxu0 %v2286_v58  ;;  %423 = vperm.xlu1 %2223, %v297_v17  }
  0x87   : > { %2013 = vmatpush3.bf16.msra.mxu1 %v2267_v44 }
  0x88   : > { %2014 = vmatprep.subr.bf16.mxu1 %v2273_v47 }
  0x89   : > { %2125 = vmatpush3.bf16.msra.mxu0 %v2286_v58  ;;  %448 = vperm.xlu0 %2222, %v302_v15  }
  0x8a   : > { %787 = vmatmul.mubr.bf16.gmra.mrb[8].mxu0 %v2797_v45  ;;  %2111 = vmatmul.mubr.bf16.gmra.mrb[8].mxu1 %v2272_v46 }
  0x8b   : > { %2015 = vmatpush3.bf16.msra.mxu1 %v2274_v48  ;;  %794 = vmatprep.mubr.bf16.mxu0 %v2803_v51 }
  0x8c   : > { %2016 = vmatprep.subr.bf16.mxu1 %v2275_v50  ;;  %2114 = vmatprep.mubr.bf16.mxu1 %v2280_v52 }
  0x8d   : > { %2126 = vmatprep.subr.bf16.mxu0 %v2291_v61  ;;  %458 = vperm.xlu0 %2222, %v304_v19  }
  0x8e   : > { %2127 = vmatpush3.bf16.msra.mxu0 %v2291_v61  ;;  %453 = vperm.xlu1 %2223, %v303_v20  }
  0x8f   : > { %2017 = vmatpush3.bf16.msra.mxu1 %v2277_v53  ;;  %2128 = vmatprep.subr.bf16.mxu0 %v2295_v63 }
  0x90   : > { %2018 = vmatprep.subr.bf16.mxu1 %v2283_v55 }
  0x91   : > { %428 = vperm.xlu0 %2222, %v298_v21  }
  0x92   : > { %795 = vmatmul.mubr.bf16.gmra.mrb[12].mxu0 %v2808_v54  ;;  %2115 = vmatmul.mubr.bf16.gmra.mrb[12].mxu1 %v2282_v56 }
  0x93   : > { %2019 = vmatpush3.bf16.msra.mxu1 %v2284_v57  ;;  %802 = vmatprep.mubr.bf16.mxu0 %v2814_v60 }
  0x94   : > { %2020 = vmatprep.subr.bf16.mxu1 %v2285_v59  ;;  %1400 = vmatprep.mubr.bf16.mxu1 %v2771_v24  ;;  %v2306_v24 = vld [vmem:[#allocation5 + $0x38] ss:$12 sps:$4 sm:$0xff]  }
  0x95   : > { %2129 = vmatpush3.bf16.msra.mxu0 %v2295_v63  ;;  %463 = vperm.xlu1 %2223, %v305_v23  }
  0x96   : > { %2130 = vmatprep.subr.bf16.mxu0 %v2299_v2  ;;  %438 = vperm.xlu0 %2222, %v300_v25  }
  0x97   : > { %2021 = vmatpush3.bf16.msra.mxu1 %v2287_v62 }
  0x99   : > { %2131 = vmatpush3.bf16.msra.mxu0 %v2299_v2  ;;  %433 = vperm.xlu1 %2223, %v299_v26  }
  0x9a   : > { %803 = vmatmul.mubr.bf16.gmra.mrb[16].mxu0 %v2290_v0  ;;  %1401 = vmatmul.mubr.bf16.vlgmr.msra.gmra.mrb[16].mxu1 %v2775_v27  ;;  %v2307_v27 = vld [vmem:[#allocation5 + $0x50] ss:$12 sps:$4 sm:$0xff]  }
  0x9b   : > { %810 = vmatprep.mubr.bf16.mxu0 %v2292_v1  ;;  %1408 = vmatprep.mubr.bf16.mxu1 %v2781_v33 }
  0x9c   : > { %2132 = vmatprep.subr.bf16.mxu0 %v2303_v3 }
  0x9d   : > { %2133 = vmatpush3.bf16.msra.mxu0 %v2303_v3  ;;  %443 = vperm.xlu1 %2223, %v301_v28  }
  0xa2   : > { %811 = vmatmul.mubr.bf16.gmra.mrb[20].mxu0 %v2294_v4  ;;  %1409 = vmatmul.mubr.bf16.gmra.mrb[20].mxu1 %v2786_v36 }
  0xa3   : > { %818 = vmatprep.mubr.bf16.mxu0 %v2296_v5  ;;  %1416 = vmatprep.mubr.bf16.mxu1 %v2792_v42 }
  0xaa   : > { %819 = vmatmul.mubr.bf16.gmra.mrb[24].mxu0 %v2298_v10  ;;  %1417 = vmatmul.mubr.bf16.gmra.mrb[24].mxu1 %v2797_v45 }
  0xab   : > { %826 = vmatprep.mubr.bf16.mxu0 %v2300_v12  ;;  %1424 = vmatprep.mubr.bf16.mxu1 %v2803_v51 }
  0xb2   : > { %827 = vmatmul.mubr.bf16.gmra.mrb[28].mxu0 %v2302_v16  ;;  %1425 = vmatmul.mubr.bf16.gmra.mrb[28].mxu1 %v2808_v54 }
  0xb3   : > { %1432 = vmatprep.mubr.bf16.mxu1 %v2814_v60  ;;  %2134 = vmatprep.mubr.bf16.mxu0 %v2304_v18 }
  0xba   : > { %1433 = vmatmul.mubr.bf16.gmra.mrb[32].mxu1 %v2290_v0  ;;  %2135 = vmatmul.mubr.bf16.vlgmr.msra.gmra.mrb[32].mxu0 %v2305_v22 }
  0xbb   : > { %1440 = vmatprep.mubr.bf16.mxu1 %v2292_v1  ;;  %2138 = vmatprep.mubr.bf16.mxu0 %v2306_v24 }
  0xc2   : > { %1441 = vmatmul.mubr.bf16.gmra.mrb[36].mxu1 %v2294_v4  ;;  %2139 = vmatmul.mubr.bf16.gmra.mrb[36].mxu0 %v2307_v27 }
  0xc3   : > { %1448 = vmatprep.mubr.bf16.mxu1 %v2296_v5  ;;  %2142 = vmatprep.mubr.bf16.mxu0 %v2308_v29 }
  0xca   : > { %1449 = vmatmul.mubr.bf16.gmra.mrb[40].mxu1 %v2298_v10  ;;  %2143 = vmatmul.mubr.bf16.gmra.mrb[40].mxu0 %v2309_v30 }
  0xcb   : > { %1456 = vmatprep.mubr.bf16.mxu1 %v2300_v12  ;;  %2146 = vmatprep.mubr.bf16.mxu0 %v2310_v31 }
  0xd2   : > { %1457 = vmatmul.mubr.bf16.gmra.mrb[44].mxu1 %v2302_v16  ;;  %2147 = vmatmul.mubr.bf16.gmra.mrb[44].mxu0 %v2311_v32 }
  0xf1   : > { %v2882_v34 = vpop.permute.xlu1 %398 }
  0xf4   : > { %v2880_v33 = vpop.permute.xlu0 %388 }
  0xf5   : > { %v2886_v36 = vpop.permute.xlu1 %403 }
  0xf8   : > { %v2884_v35 = vpop.permute.xlu0 %393 }
  0xfd   : > { %v2888_v37 = vpop.permute.xlu0 %408  ;;  %v2890_v38 = vpop.permute.xlu1 %413 }
 0x104   : > { %v2896_v52 = vpop.permute.xlu0 %418 }
 0x105   : > { %v2898_v53 = vpop.permute.xlu1 %423 }
 0x108   : > { %v2906_v4 = vpop.permute.xlu0 %448 }
 0x10c   : > { %v2918_v20 = vpop.permute.xlu0 %458 }
 0x10d   : > { %v2908_v5 = vpop.permute.xlu1 %453 }
 0x114   : > { %v2920_v21 = vpop.permute.xlu1 %463 }
 0x14d   : > { %v1942_v39 = vpop.f32.mrb[0].mxu0  ;;  %v2104_v40 = vpop.f32.mrb[0].mxu1 }
 0x14e   : > { %v1943_v41 = vpop.f32.mrb[1].mxu0  ;;  %v869_v42 = vpop.f32.mrb[1].mxu1 }
 0x14f   : > { %v1944_v43 = vadd.f32 %v1943_v41, %v1942_v39  ;;  %v1945_v44 = vpop.f32.mrb[2].mxu0  ;;  %v2105_v45 = vpop.f32.mrb[2].mxu1 }
 0x150   : > { %v1946_v46 = vpop.f32.mrb[3].mxu0  ;;  %v872_v47 = vpop.f32.mrb[3].mxu1 }
 0x151   : > { %v773_v48 = vadd.f32 %v1944_v43, %v2880_v33  ;;  %v1947_v49 = vadd.f32 %v1946_v46, %v1945_v44  ;;  %v2934_v43 = vpop.permute.xlu1 %433 }
 0x153   : > { %v2893_v50 = vadd.f32 %v869_v42, %v773_v48  ;;  %v776_v51 = vadd.f32 %v1947_v49, %v2884_v35  ;;  %v2932_v42 = vpop.permute.xlu0 %428 }
 0x155   : > { %v2900_v54 = vadd.f32 %v872_v47, %v776_v51  ;;  %v1948_v55 = vpop.f32.mrb[4].mxu0  ;;  %v2108_v56 = vpop.f32.mrb[4].mxu1 }
 0x156   : > { %v1949_v57 = vpop.f32.mrb[5].mxu0  ;;  %v885_v58 = vpop.f32.mrb[5].mxu1 }
 0x157   : > { %v1950_v59 = vadd.f32 %v1949_v57, %v1948_v55  ;;  %v1951_v60 = vpop.f32.mrb[6].mxu0  ;;  %v2109_v61 = vpop.f32.mrb[6].mxu1 }
 0x158   : > { %v1952_v62 = vpop.f32.mrb[7].mxu0  ;;  %v888_v63 = vpop.f32.mrb[7].mxu1 }
 0x159   : > { %v781_v0 = vadd.f32 %v1950_v59, %v2882_v34  ;;  %v1953_v1 = vadd.f32 %v1952_v62, %v1951_v60 }
 0x15b   : > { %v2903_v2 = vadd.f32 %v2104_v40, %v781_v0  ;;  %v784_v3 = vadd.f32 %v1953_v1, %v2886_v36  ;;  %v2944_v1 = vpop.permute.xlu1 %443 }
 0x15d   : > { %v2910_v6 = vadd.f32 %v2105_v45, %v784_v3  ;;  %v1954_v7 = vpop.f32.mrb[8].mxu0  ;;  %v2912_v8 = vpop.f32.mrb[8].mxu1 }
 0x15e   : > { %v1955_v9 = vpop.f32.mrb[9].mxu0  ;;  %v901_v10 = vpop.f32.mrb[9].mxu1 }
 0x15f   : > { %v1956_v11 = vadd.f32 %v1955_v9, %v1954_v7  ;;  %v1957_v12 = vpop.f32.mrb[10].mxu0  ;;  %v2914_v13 = vpop.f32.mrb[10].mxu1 }
 0x160   : > { %v1958_v14 = vpop.f32.mrb[11].mxu0  ;;  %v904_v15 = vpop.f32.mrb[11].mxu1 }
 0x161   : > { %v1959_v16 = vadd.f32 %v1958_v14, %v1957_v12  ;;  %v789_v17 = vadd.f32 %v1956_v11, %v2888_v37 }
 0x163   : > { %v886_v18 = vadd.f32 %v885_v58, %v789_v17  ;;  %v792_v19 = vadd.f32 %v1959_v16, %v2890_v38  ;;  %v932_v16 = vmul.f32 0.5, %v2893_v50 }
 0x165   : > { %v889_v22 = vadd.f32 %v888_v63, %v792_v19  ;;  %v1960_v23 = vpop.f32.mrb[12].mxu0  ;;  %v2922_v24 = vpop.f32.mrb[12].mxu1  ;;  %v936_v11 = vmul.f32 0.5, %v886_v18 }
 0x166   : > { %v1961_v25 = vpop.f32.mrb[13].mxu0  ;;  %v2924_v26 = vpop.f32.mrb[13].mxu1 }
 0x167   : > { %v1962_v27 = vadd.f32 %v1961_v25, %v1960_v23  ;;  %v1963_v28 = vpop.f32.mrb[14].mxu0  ;;  %v2926_v29 = vpop.f32.mrb[14].mxu1  ;;  %v933_v25 = vmul.f32 0.5, %v2900_v54  ;;  %2312 = vtanh.f32 %v936_v11 }
 0x168   : > { %v1964_v30 = vpop.f32.mrb[15].mxu0  ;;  %v2928_v31 = vpop.f32.mrb[15].mxu1  ;;  %2314 = vtanh.f32 %v932_v16 }
 0x169   : > { %v797_v32 = vadd.f32 %v1962_v27, %v2896_v52  ;;  %v1965_v39 = vadd.f32 %v1964_v30, %v1963_v28  ;;  %v937_v30 = vmul.f32 0.5, %v889_v22  ;;  %2316 = vtanh.f32 %v933_v25 }
 0x16a   : > { %v934_v22 = vmul.f32 0.5, %v2903_v2  ;;  %v935_v2 = vmul.f32 0.5, %v2910_v6 }
 0x16b   : > { %v894_v40 = vadd.f32 %v2108_v56, %v797_v32  ;;  %v800_v41 = vadd.f32 %v1965_v39, %v2898_v53  ;;  %2318 = vtanh.f32 %v937_v30 }
 0x16c   : > { %2320 = vtanh.f32 %v934_v22 }
 0x16d   : > { %v897_v44 = vadd.f32 %v2109_v61, %v800_v41  ;;  %v1966_v45 = vpop.f32.mrb[16].mxu0  ;;  %v2022_v46 = vpop.f32.mrb[16].mxu1 }
 0x16e   : > { %v1967_v47 = vpop.f32.mrb[17].mxu0  ;;  %v2023_v48 = vpop.f32.mrb[17].mxu1 }
 0x16f   : > { %v1968_v49 = vadd.f32 %v1967_v47, %v1966_v45  ;;  %v2936_v51 = vadd.f32 %v2023_v48, %v2022_v46  ;;  %v1969_v55 = vpop.f32.mrb[18].mxu0  ;;  %v2025_v57 = vpop.f32.mrb[18].mxu1  ;;  %v938_v48 = vmul.f32 0.5, %v894_v40 }
 0x170   : > { %v1970_v58 = vpop.f32.mrb[19].mxu0  ;;  %v2026_v59 = vpop.f32.mrb[19].mxu1 }
 0x171   : > { %v1971_v60 = vadd.f32 %v1970_v58, %v1969_v55  ;;  %v2938_v56 = vadd.f32 %v2026_v59, %v2025_v57  ;;  %v805_v62 = vadd.f32 %v1968_v49, %v2932_v42  ;;  %v2942_v61 = vpop.permute.xlu0 %438  ;;  %v939_v58 = vmul.f32 0.5, %v897_v44  ;;  %v2313_v44 = vpop.eup %2312 }
 0x172   : > { %2322 = vtanh.f32 %v938_v48  ;;  %v960_v25 = vmul.f32 0.5, %v2313_v44 }
 0x173   : > { %v902_v63 = vadd.f32 %v901_v10, %v805_v62  ;;  %v808_v0 = vadd.f32 %v1971_v60, %v2934_v43  ;;  %2324 = vtanh.f32 %v939_v58 }
 0x175   : > { %v2946_v3 = vadd.f32 %v904_v15, %v808_v0  ;;  %v1972_v7 = vpop.f32.mrb[20].mxu0  ;;  %v2028_v9 = vpop.f32.mrb[20].mxu1  ;;  %v940_v6 = vmul.f32 0.5, %v902_v63 }
 0x176   : > { %v1973_v12 = vpop.f32.mrb[21].mxu0  ;;  %v2029_v14 = vpop.f32.mrb[21].mxu1 }
 0x177   : > { %v1974_v17 = vadd.f32 %v1973_v12, %v1972_v7  ;;  %v2949_v19 = vadd.f32 %v2029_v14, %v2028_v9  ;;  %v1975_v23 = vpop.f32.mrb[22].mxu0  ;;  %v2031_v10 = vpop.f32.mrb[22].mxu1 }
 0x178   : > { %v1976_v27 = vpop.f32.mrb[23].mxu0  ;;  %v2032_v28 = vpop.f32.mrb[23].mxu1 }
 0x179   : > { %v1977_v15 = vadd.f32 %v1976_v27, %v1975_v23  ;;  %v2952_v32 = vadd.f32 %v2032_v28, %v2031_v10  ;;  %v813_v18 = vadd.f32 %v1974_v17, %v2942_v61  ;;  %v2315_v9 = vpop.eup %2314 }
 0x17a   : > { %v2317_v16 = vpop.eup %2316 }
 0x17b   : > { %v2956_v50 = vadd.f32 %v2912_v8, %v813_v18  ;;  %v816_v39 = vadd.f32 %v1977_v15, %v2944_v1  ;;  %v2319_v10 = vpop.eup %2318  ;;  %v956_v15 = vmul.f32 0.5, %v2315_v9  ;;  %v941_v18 = vmul.f32 0.5, %v2946_v3 }
 0x17d   : > { %v2960_v54 = vadd.f32 %v2914_v13, %v816_v39  ;;  %v1978_v41 = vpop.f32.mrb[24].mxu0  ;;  %v2034_v45 = vpop.f32.mrb[24].mxu1  ;;  %v942_v58 = vmul.f32 0.5, %v2956_v50 }
 0x17e   : > { %v1979_v46 = vpop.f32.mrb[25].mxu0  ;;  %v2035_v47 = vpop.f32.mrb[25].mxu1 }
 0x17f   : > { %v1980_v49 = vadd.f32 %v1979_v46, %v1978_v41  ;;  %v2964_v8 = vadd.f32 %v2035_v47, %v2034_v45  ;;  %v1981_v55 = vpop.f32.mrb[26].mxu0  ;;  %v2037_v57 = vpop.f32.mrb[26].mxu1  ;;  %v957_v41 = vmul.f32 0.5, %v2317_v16  ;;  %v961_v46 = vmul.f32 0.5, %v2319_v10 }
 0x180   : > { %v1982_v59 = vpop.f32.mrb[27].mxu0  ;;  %v2038_v60 = vpop.f32.mrb[27].mxu1  ;;  %v972_v47 = vadd.f32 0.5, %v960_v25 }
 0x181   : > { %v821_v13 = vadd.f32 %v1980_v49, %v2906_v4  ;;  %v1983_v62 = vadd.f32 %v1982_v59, %v1981_v55  ;;  %v2967_v0 = vadd.f32 %v2038_v60, %v2037_v57  ;;  %v2321_v49 = vpop.eup %2320  ;;  %v968_v55 = vadd.f32 0.5, %v956_v15  ;;  %v984_v57 = vld [vmem:[%s2985_s10] sm:$0xff] }
 0x182   : > { %v1411_v59 = vadd.f32 %v2949_v19, %v2882_v34  ;;  %v2323_v60 = vpop.eup %2322  ;;  %v973_v44 = vadd.f32 0.5, %v961_v46  ;;  %v1414_v34 = vadd.f32 %v2952_v32, %v2886_v36  ;;  %v1406_v19 = vadd.f32 %v2938_v56, %v2884_v35 }
 0x183   : > { %v918_v40 = vadd.f32 %v2924_v26, %v821_v13  ;;  %v824_v7 = vadd.f32 %v1983_v62, %v2908_v5  ;;  %v969_v13 = vadd.f32 0.5, %v957_v41  ;;  %v958_v56 = vmul.f32 0.5, %v2321_v49 }
 0x185   : > { %2326 = vtanh.f32 %v918_v40  ;;  %v921_v11 = vadd.f32 %v2928_v31, %v824_v7  ;;  %v1984_v12 = vpop.f32.mrb[28].mxu0  ;;  %v2040_v14 = vpop.f32.mrb[28].mxu1  ;;  %v1403_v40 = vadd.f32 %v2936_v51, %v2880_v33 }
 0x186   : > { %2328 = vtanh.f32 %v935_v2  ;;  %v1985_v17 = vpop.f32.mrb[29].mxu0  ;;  %v2041_v23 = vpop.f32.mrb[29].mxu1 }
 0x187   : > { %2330 = vtanh.f32 %v921_v11  ;;  %v1986_v26 = vadd.f32 %v1985_v17, %v1984_v12  ;;  %v2979_v27 = vadd.f32 %v2041_v23, %v2040_v14  ;;  %v1987_v28 = vpop.f32.mrb[30].mxu0  ;;  %v2043_v30 = vpop.f32.mrb[30].mxu1  ;;  %v985_v14 = vld [vmem:[%s2985_s10 + $0x10] sm:$0xff]  ;;  %v962_v23 = vmul.f32 0.5, %v2323_v60 }
 0x188   : > { %v1988_v31 = vpop.f32.mrb[31].mxu0  ;;  %v2044_v39 = vpop.f32.mrb[31].mxu1  ;;  %2332 = vtanh.f32 %v940_v6  ;;  %v989_v15 = vmul.f32 %v985_v14, %v973_v44 }
 0x189   : > { %v829_v63 = vadd.f32 %v1986_v26, %v2918_v20  ;;  %v1989_v45 = vadd.f32 %v1988_v31, %v1987_v28  ;;  %v2988_v22 = vadd.f32 %v2044_v39, %v2043_v30  ;;  %2334 = vtanh.f32 %v941_v18  ;;  %v2325_v7 = vpop.eup %2324 }
 0x18a   : > { %v943_v26 = vmul.f32 0.5, %v2960_v54  ;;  %v963_v18 = vmul.f32 0.5, %v2325_v7  ;;  %v1427_v46 = vadd.f32 %v2979_v27, %v2896_v52  ;;  %v987_v27 = vld [vmem:[%s2985_s10 + $0x30] sm:$0xff] }
 0x18b   : > { %v926_v48 = vadd.f32 %v2922_v24, %v829_v63  ;;  %v832_v3 = vadd.f32 %v1989_v45, %v2920_v21  ;;  %v974_v45 = vadd.f32 0.5, %v962_v23 }
 0x18d   : > { %2336 = vtanh.f32 %v926_v48  ;;  %v929_v62 = vadd.f32 %v2926_v29, %v832_v3  ;;  %v2046_v2 = vpop.f32.mrb[32].mxu1  ;;  %v2136_v24 = vpop.f32.mrb[32].mxu0  ;;  %v988_v29 = vmul.f32 %v984_v57, %v972_v47  ;;  %v970_v47 = vadd.f32 0.5, %v958_v56  ;;  %v986_v48 = vld [vmem:[%s2985_s10 + $0x20] sm:$0xff] }
 0x18e   : > { %v3000_v9 = vadd.f32 %v2136_v24, %v1411_v59  ;;  %v2047_v50 = vpop.f32.mrb[33].mxu1  ;;  %v1499_v11 = vpop.f32.mrb[33].mxu0 }
 0x18f   : > { %v2327_v12 = vpop.eup %2326  ;;  %2338 = vtanh.f32 %v929_v62  ;;  %v3007_v16 = vadd.f32 %v2047_v50, %v2046_v2  ;;  %v3009_v33 = vadd.f32 %v1499_v11, %v1403_v40  ;;  %v2049_v51 = vpop.f32.mrb[34].mxu1  ;;  %v1430_v62 = vadd.f32 %v2988_v22, %v2898_v53 }
 0x190   : > { %v2137_v6 = vpop.f32.mrb[34].mxu0  ;;  %v2329_v17 = vpop.eup %2328  ;;  %2340 = vtanh.f32 %v942_v58  ;;  %v992_v10 = vmul.f32 %v2327_v12, %v968_v55  ;;  %v1419_v55 = vadd.f32 %v2964_v8, %v2888_v37  ;;  %v975_v58 = vadd.f32 0.5, %v963_v18 }
 0x191   : > { %v3011_v25 = vadd.f32 %v2137_v6, %v1414_v34  ;;  %v2050_v36 = vpop.f32.mrb[35].mxu1  ;;  %v1502_v32 = vpop.f32.mrb[35].mxu0  ;;  %v959_v41 = vmul.f32 0.5, %v2329_v17  ;;  %v1422_v37 = vadd.f32 %v2967_v0, %v2890_v38  ;;  %v990_v50 = vmul.f32 %v986_v48, %v974_v45 }
 0x192   : > { %v2331_v35 = vpop.eup %2330  ;;  %v3014_v28 = vadd.f32 %v2050_v36, %v2049_v51  ;;  %v3016_v30 = vadd.f32 %v1502_v32, %v1406_v19  ;;  %v996_v31 = vadd.f32 %v992_v10, %v988_v29  ;;  %v991_v6 = vmul.f32 %v987_v27, %v975_v58 }
 0x193   : > { %v993_v39 = vmul.f32 %v2331_v35, %v969_v13  ;;  %v2333_v63 = vpop.eup %2332  ;;  %v971_v8 = vadd.f32 0.5, %v959_v41  ;;  %v1562_v0 = vmul.f32 0.5, %v3009_v33 }
 0x194   : > { %2342 = vtanh.f32 %v996_v31  ;;  %1008 = vst [vmem:[%s3020_s13] sm:$0xff] %v996_v31  ;;  %v2335_v57 = vpop.eup %2334  ;;  %v964_v2 = vmul.f32 0.5, %v2333_v63  ;;  %v1435_v31 = vadd.f32 %v3007_v16, %v2932_v42 }
 0x195   : > { %v997_v54 = vadd.f32 %v993_v39, %v989_v15  ;;  %2344 = vtanh.f32 %v943_v26  ;;  %v2052_v3 = vpop.f32.mrb[36].mxu1  ;;  %v2140_v49 = vpop.f32.mrb[36].mxu0  ;;  %v965_v14 = vmul.f32 0.5, %v2335_v57  ;;  %v1564_v26 = vmul.f32 0.5, %v3000_v9 }
 0x196   : > { %v1524_v59 = vadd.f32 %v2140_v49, %v1427_v46  ;;  %v2053_v60 = vpop.f32.mrb[37].mxu1  ;;  %v1515_v13 = vpop.f32.mrb[37].mxu0  ;;  %v976_v10 = vadd.f32 0.5, %v964_v2 }
 0x197   : > { %2346 = vtanh.f32 %v997_v54  ;;  %1009 = vst [vmem:[%s3020_s13 + $0x10] sm:$0xff] %v997_v54  ;;  %v2337_v52 = vpop.eup %2336  ;;  %v2054_v24 = vadd.f32 %v2053_v60, %v2052_v3  ;;  %v1516_v40 = vadd.f32 %v1515_v13, %v1419_v55  ;;  %v2055_v7 = vpop.f32.mrb[38].mxu1  ;;  %v977_v35 = vadd.f32 0.5, %v965_v14 }
 0x198   : > { %v2141_v44 = vpop.f32.mrb[38].mxu0  ;;  %v994_v11 = vmul.f32 %v2337_v52, %v970_v47  ;;  %v2056_v19 = vpop.f32.mrb[39].mxu1  ;;  %v1568_v41 = vmul.f32 0.5, %v1524_v59  ;;  %v1563_v3 = vmul.f32 0.5, %v3016_v30  ;;  %v1565_v30 = vmul.f32 0.5, %v3011_v25 }
 0x199   : > { %v1527_v34 = vadd.f32 %v2141_v44, %v1430_v62  ;;  %v1518_v12 = vpop.f32.mrb[39].mxu0  ;;  %v2339_v29 = vpop.eup %2338  ;;  %v2057_v53 = vadd.f32 %v2056_v19, %v2055_v7  ;;  %v1566_v36 = vmul.f32 0.5, %v1516_v40  ;;  %v1443_v32 = vadd.f32 %v2054_v24, %v2942_v61 }
 0x19a   : > { %v1519_v22 = vadd.f32 %v1518_v12, %v1422_v37  ;;  %v2341_v51 = vpop.eup %2340  ;;  %v998_v17 = vadd.f32 %v994_v11, %v990_v50  ;;  %v995_v23 = vmul.f32 %v2339_v29, %v971_v8  ;;  %v1438_v61 = vadd.f32 %v3014_v28, %v2934_v43 }
 0x19b   : > { %v966_v56 = vmul.f32 0.5, %v2341_v51  ;;  %v1446_v48 = vadd.f32 %v2057_v53, %v2944_v1  ;;  %v1569_v60 = vmul.f32 0.5, %v1527_v34 }
 0x19c   : > { %2348 = vtanh.f32 %v998_v17  ;;  %1010 = vst [vmem:[%s3020_s13 + $0x20] sm:$0xff] %v998_v17  ;;  %v999_v38 = vadd.f32 %v995_v23, %v991_v6  ;;  %v1567_v49 = vmul.f32 0.5, %v1519_v22 }
 0x19d   : > { %v2058_v15 = vpop.f32.mrb[40].mxu1  ;;  %v2144_v18 = vpop.f32.mrb[40].mxu0  ;;  %v978_v62 = vadd.f32 0.5, %v966_v56 }
 0x19e   : > { %v2343_v39 = vpop.eup %2342  ;;  %2350 = vtanh.f32 %v999_v38  ;;  %1011 = vst [vmem:[%s3020_s13 + $0x30] sm:$0xff] %v999_v38  ;;  %v3041_v63 = vadd.f32 %v2144_v18, %v1443_v32  ;;  %v2059_v45 = vpop.f32.mrb[41].mxu1 }
 0x19f   : > { %v1531_v54 = vpop.f32.mrb[41].mxu0  ;;  %v2345_v33 = vpop.eup %2344  ;;  %v1004_v46 = vmul.f32 %v2343_v39, %v976_v10  ;;  %2352 = vtanh.f32 %v1566_v36  ;;  %v2060_v9 = vadd.f32 %v2059_v45, %v2058_v15 }
 0x1a0   : > { %v2061_v47 = vpop.f32.mrb[42].mxu1  ;;  %v2145_v42 = vpop.f32.mrb[42].mxu0  ;;  %2354 = vtanh.f32 %v1562_v0  ;;  %v1532_v55 = vadd.f32 %v1531_v54, %v1435_v31  ;;  %v967_v13 = vmul.f32 0.5, %v2345_v33  ;;  %v1572_v18 = vmul.f32 0.5, %v3041_v63  ;;  %v1614_v31 = vld [vmem:[%s2985_s10 + $0x8] sm:$0xff] }
 0x1a1   : > { %v2347_v16 = vpop.eup %2346  ;;  %v2062_v57 = vpop.f32.mrb[43].mxu1  ;;  %1012 = vst [vmem:[%s3049_s6] sm:$0xff] %v1004_v46  ;;  %v3052_v28 = vadd.f32 %v2145_v42, %v1446_v48  ;;  %2356 = vtanh.f32 %v1564_v26  ;;  %v1451_v2 = vadd.f32 %v2060_v9, %v2906_v4 }
 0x1a2   : > { %v1534_v58 = vpop.f32.mrb[43].mxu0  ;;  %v1005_v43 = vmul.f32 %v2347_v16, %v977_v35  ;;  %v2063_v59 = vadd.f32 %v2062_v57, %v2061_v47  ;;  %2358 = vtanh.f32 %v1568_v41  ;;  %v979_v44 = vadd.f32 0.5, %v967_v13  ;;  %v1616_v16 = vld [vmem:[%s2985_s10 + $0x28] sm:$0xff] }
 0x1a3   : > { %v1535_v1 = vadd.f32 %v1534_v58, %v1438_v61  ;;  %2360 = vtanh.f32 %v1567_v49  ;;  %v1570_v6 = vmul.f32 0.5, %v1532_v55  ;;  %v1573_v9 = vmul.f32 0.5, %v3052_v28  ;;  %v1615_v55 = vld [vmem:[%s2985_s10 + $0x18] sm:$0xff] }
 0x1a4   : > { %1013 = vst [vmem:[%s3049_s6 + $0x10] sm:$0xff] %v1005_v43  ;;  %2362 = vtanh.f32 %v1563_v3  ;;  %v1454_v53 = vadd.f32 %v2063_v59, %v2908_v5 }
 0x1a5   : > { %v2064_v52 = vpop.f32.mrb[44].mxu1  ;;  %v2148_v27 = vpop.f32.mrb[44].mxu0  ;;  %2364 = vtanh.f32 %v1569_v60  ;;  %v1571_v41 = vmul.f32 0.5, %v1535_v1  ;;  %v1617_v60 = vld [vmem:[%s2985_s10 + $0x38] sm:$0xff] }
 0x1a6   : > { %v2349_v24 = vpop.eup %2348  ;;  %v2065_v40 = vpop.f32.mrb[45].mxu1  ;;  %2366 = vtanh.f32 %v1565_v30 }
 0x1a7   : > { %v1547_v7 = vpop.f32.mrb[45].mxu0  ;;  %v1006_v37 = vmul.f32 %v2349_v24, %v978_v62  ;;  %v2066_v8 = vadd.f32 %v2065_v40, %v2064_v52  ;;  %v2067_v11 = vpop.f32.mrb[46].mxu1 }
 0x1a8   : > { %v1548_v50 = vadd.f32 %v1547_v7, %v1451_v2  ;;  %v2149_v34 = vpop.f32.mrb[46].mxu0  ;;  %v2351_v25 = vpop.eup %2350 }
 0x1a9   : > { %v2068_v19 = vpop.f32.mrb[47].mxu1  ;;  %v1550_v12 = vpop.f32.mrb[47].mxu0  ;;  %1014 = vst [vmem:[%s3049_s6 + $0x20] sm:$0xff] %v1006_v37  ;;  %v1007_v14 = vmul.f32 %v2351_v25, %v979_v44  ;;  %v1459_v4 = vadd.f32 %v2066_v8, %v2918_v20 }
 0x1aa   : > { %v2353_v29 = vpop.eup %2352  ;;  %2368 = vtanh.f32 %v1548_v50  ;;  %v2069_v51 = vadd.f32 %v2068_v19, %v2067_v11  ;;  %v1551_v23 = vadd.f32 %v1550_v12, %v1454_v53 }
 0x1ab   : > { %v2355_v22 = vpop.eup %2354  ;;  %1015 = vst [vmem:[%s3049_s6 + $0x30] sm:$0xff] %v1007_v14  ;;  %v1556_v17 = vadd.f32 %v2148_v27, %v1459_v4  ;;  %v1590_v36 = vmul.f32 0.5, %v2353_v29 }
 0x1ac   : > { %v2357_v10 = vpop.eup %2356  ;;  %v1462_v38 = vadd.f32 %v2069_v51, %v2920_v21  ;;  %v1586_v35 = vmul.f32 0.5, %v2355_v22 }
 0x1ad   : > { %v2359_v0 = vpop.eup %2358  ;;  %2370 = vtanh.f32 %v1556_v17  ;;  %v1602_v15 = vadd.f32 0.5, %v1590_v36  ;;  %v1588_v21 = vmul.f32 0.5, %v2357_v10 }
 0x1ae   : > { %v2361_v32 = vpop.eup %2360  ;;  %v1559_v56 = vadd.f32 %v2149_v34, %v1462_v38  ;;  %2372 = vtanh.f32 %v1551_v23  ;;  %v1592_v26 = vmul.f32 0.5, %v2359_v0  ;;  %v1598_v54 = vadd.f32 0.5, %v1586_v35 }
 0x1af   : > { %v2363_v20 = vpop.eup %2362  ;;  %2374 = vtanh.f32 %v1570_v6  ;;  %v1591_v39 = vmul.f32 0.5, %v2361_v32  ;;  %v1618_v48 = vmul.f32 %v1614_v31, %v1602_v15  ;;  %v1600_v49 = vadd.f32 0.5, %v1588_v21 }
 0x1b0   : > { %v2365_v5 = vpop.eup %2364  ;;  %2376 = vtanh.f32 %v1559_v56  ;;  %v1587_v33 = vmul.f32 0.5, %v2363_v20  ;;  %v1604_v47 = vadd.f32 0.5, %v1592_v26 }
 0x1b1   : > { %v2367_v45 = vpop.eup %2366  ;;  %v1593_v46 = vmul.f32 0.5, %v2365_v5  ;;  %2378 = vtanh.f32 %v1572_v18  ;;  %v1603_v3 = vadd.f32 0.5, %v1591_v39 }
 0x1b2   : > { %v1589_v63 = vmul.f32 0.5, %v2367_v45  ;;  %2380 = vtanh.f32 %v1571_v41  ;;  %v1599_v43 = vadd.f32 0.5, %v1587_v33  ;;  %v1620_v1 = vmul.f32 %v1616_v16, %v1604_v47 }
 0x1b3   : > { %v1605_v59 = vadd.f32 0.5, %v1593_v46  ;;  %2382 = vtanh.f32 %v1573_v9  ;;  %v1619_v52 = vmul.f32 %v1615_v55, %v1603_v3 }
 0x1b4   : > { %v2369_v61 = vpop.eup %2368  ;;  %v1601_v62 = vadd.f32 0.5, %v1589_v63 }
 0x1b5   : > { %v1622_v42 = vmul.f32 %v2369_v61, %v1598_v54  ;;  %v1621_v40 = vmul.f32 %v1617_v60, %v1605_v59 }
 0x1b7   : > { %v1626_v57 = vadd.f32 %v1622_v42, %v1618_v48  ;;  %v2371_v58 = vpop.eup %2370 }
 0x1b8   : > { %v2373_v28 = vpop.eup %2372  ;;  %v1624_v13 = vmul.f32 %v2371_v58, %v1600_v49 }
 0x1b9   : > { %2384 = vtanh.f32 %v1626_v57  ;;  %1638 = vst [vmem:[%s3020_s13 + $0x8] sm:$0xff] %v1626_v57  ;;  %v2375_v30 = vpop.eup %2374  ;;  %v1623_v27 = vmul.f32 %v2373_v28, %v1599_v43 }
 0x1ba   : > { %v2377_v2 = vpop.eup %2376  ;;  %v1628_v24 = vadd.f32 %v1624_v13, %v1620_v1  ;;  %v1594_v37 = vmul.f32 0.5, %v2375_v30 }
 0x1bb   : > { %v1625_v7 = vmul.f32 %v2377_v2, %v1601_v62  ;;  %v1627_v44 = vadd.f32 %v1623_v27, %v1619_v52  ;;  %v2379_v50 = vpop.eup %2378 }
 0x1bc   : > { %2386 = vtanh.f32 %v1628_v24  ;;  %1640 = vst [vmem:[%s3020_s13 + $0x28] sm:$0xff] %v1628_v24  ;;  %v2381_v11 = vpop.eup %2380 }
 0x1bd   : > { %v1629_v8 = vadd.f32 %v1625_v7, %v1621_v40  ;;  %2388 = vtanh.f32 %v1627_v44  ;;  %1639 = vst [vmem:[%s3020_s13 + $0x18] sm:$0xff] %v1627_v44 }
 0x1bf   : > { %2390 = vtanh.f32 %v1629_v8  ;;  %1641 = vst [vmem:[%s3020_s13 + $0x38] sm:$0xff] %v1629_v8 }
 0x1c0   : > { %2463 = shalt.err (!%p2460_p9)
}
 0x1c1   : > { %s2464_s15 = scalar_lea.hbm %s3078_s29, 1024  ;;  %s2468_s13 = scalar_lea.hbm %s3174_s5, 2048 }
 0x1c2   : > { %p2465_p2 = scmp.ne.s32.totalorder %s3078_s29, %s2464_s15  ;;  %p2469_p11 = scmp.lt.u32.totalorder %s3078_s29, %s3174_s5 }
 0x1c3   : > { %p2470_p1 = scmp.lt.u32.totalorder %s2468_s13, %s2464_s15  ;;  %p2472_p6 = scmp.lt.u32.totalorder %s2464_s15, %s3078_s29 }
 0x1c4   : > { %p2466_p0 = pnand %p2465_p2, %p2686_p12 }
 0x1c5   : > { %p2471_p4 = por %p2470_p1, %p2469_p11 }
 0x1c6   : > { %p2467_p5 = pneg %p2466_p0 }
 0x1c7   : > { %p2473_p8 = por %p2472_p6, %p2471_p4 }
 0x1c9   : > { %p2474_p10 = pnand %p2473_p8, %p2467_p5 }
 0x1cb   : > { %2477 = shalt.err (!%p2474_p10)
}
 0x1cc   : > { %s2562_s26 = smov 256   ;;  %s2563_s14 = smov 16   ;;  %v2383_v34 = vpop.eup %2382  ;;  %v1596_v25 = vmul.f32 0.5, %v2379_v50  ;;  %v1606_v19 = vadd.f32 0.5, %v1594_v37  ;;  %v1595_v29 = vmul.f32 0.5, %v2381_v11 }
 0x1cd   : > { %2160 = dma.vmem_to_hbm [thread:$0]  (%p2686_p12), %s3080_s17, 1024, %s3078_s29, %s1652_s24, %s2562_s26, %s2562_s26, %s2563_s14   ;;  %v2385_v12 = vpop.eup %2384  ;;  %v1597_v4 = vmul.f32 0.5, %v2383_v34 }
 0x1ce   : > { %v1634_v14 = vmul.f32 %v2385_v12, %v1606_v19  ;;  %v1608_v53 = vadd.f32 0.5, %v1596_v25  ;;  %v2387_v22 = vpop.eup %2386  ;;  %v1607_v51 = vadd.f32 0.5, %v1595_v29  ;;  %s1665_s17 = sshll.u32 %s3049_s6, 4  ;;  %s3119_s28 = scalar_lea.hbm %s3173_s4, %s1924_s16  ;;  %s3121_s17 = int_to_ptr.vmem [resolvable:$true] %s1665_s17 }
 0x1cf   : > { %v2389_v6 = vpop.eup %2388  ;;  %v1609_v23 = vadd.f32 0.5, %v1597_v4  ;;  %s1647_s7 = scalar_lea.sflag [#allocation4], %s2734_s23  ;;  %s2478_s15 = scalar_lea.vmem %s3121_s17, 1024 }
 0x1d0   : > { %1642 = vst [vmem:[%s3049_s6 + $0x8] sm:$0xff] %v1634_v14  ;;  %v1636_v17 = vmul.f32 %v2387_v22, %v1608_v53  ;;  %v1635_v10 = vmul.f32 %v2389_v6, %v1607_v51  ;;  %v2391_v36 = vpop.eup %2390  ;;  %p2479_p13 = scmp.ne.s32.totalorder %s3121_s17, %s2478_s15  ;;  %s2564_s10 = smov [#allocation7]  }
 0x1d1   : > { %v1637_v38 = vmul.f32 %v2391_v36, %v1609_v23  ;;  %s2482_s12 = sshll.u32 %s2564_s10, 4  ;;  %s2483_s12 = int_to_ptr.vmem [resolvable:$false] %s2482_s12 }
 0x1d2   : > { %1644 = vst [vmem:[%s3049_s6 + $0x28] sm:$0xff] %v1636_v17  ;;  %1643 = vst [vmem:[%s3049_s6 + $0x18] sm:$0xff] %v1635_v10  ;;  %p2480_p3 = pnand %p2479_p13, %p2686_p12  ;;  %s2484_s22 = scalar_lea.vmem %s2483_s12, 2048 }
 0x1d3   : > { %1645 = vst [vmem:[%s3049_s6 + $0x38] sm:$0xff] %v1637_v38  ;;  %p2485_p9 = scmp.lt.s32.totalorder %s3121_s17, %s2483_s12  ;;  %p2486_p2 = scmp.lt.s32.totalorder %s2484_s22, %s2478_s15 }
 0x1d4   : > { %p2481_p7 = pneg %p2480_p3 }
 0x1d5   : > { %p2487_p0 = por %p2486_p2, %p2485_p9 }
 0x1d7   : > { %p2488_p5 = pnand %p2487_p0, %p2481_p7 }
 0x1d9   : > { %2491 = shalt.err (!%p2488_p5)
}
 0x1da   : > { %s2492_s6 = scalar_lea.hbm %s3119_s28, 1024  ;;  %s2496_s27 = scalar_lea.hbm %s3173_s4, 2048 }
 0x1db   : > { %p2493_p11 = scmp.ne.s32.totalorder %s3119_s28, %s2492_s6  ;;  %p2497_p6 = scmp.lt.u32.totalorder %s3119_s28, %s3173_s4 }
 0x1dc   : > { %p2498_p8 = scmp.lt.u32.totalorder %s2496_s27, %s2492_s6  ;;  %p2500_p13 = scmp.lt.u32.totalorder %s2492_s6, %s3119_s28 }
 0x1dd   : > { %p2494_p1 = pnand %p2493_p11, %p2686_p12 }
 0x1de   : > { %p2499_p10 = por %p2498_p8, %p2497_p6 }
 0x1df   : > { %p2495_p4 = pneg %p2494_p1 }
 0x1e0   : > { %p2501_p3 = por %p2500_p13, %p2499_p10 }
 0x1e2   : > { %p2502_p7 = pnand %p2501_p3, %p2495_p4 }
 0x1e4   : > { %2505 = shalt.err (!%p2502_p7)
}
 0x1e5   : > { %2159 = dma.vmem_to_hbm [thread:$0]  (%p2686_p12), %s3121_s17, 1024, %s3119_s28, %s1647_s7, %s2562_s26, %s2562_s26, %s2563_s14  }
 0x1e6 PF: > { %s1696_s24 = sand.u32 1, %s2540_s18   ;;  %p3189_p9 = scmp.ne.s32.totalorder %s3179_s25, 0 }
 0x1e7   : > { %p3190_p2 = scmp.ge.s32.totalorder %s2552_s21, 2  ;;  %s1697_s15 = scalar_lea.sflag [#allocation4], %s1696_s24 }
 0x1e9   : > { %p2172_p0 = pnand %p3190_p2, %p3189_p9 }
 0x1eb   : > { %2531 = dma.done.wait (!%p2172_p0), %s1697_s15, 1024  }
 0x1ec   : > { %2533 = vsyncadd (!%p2172_p0), %s1697_s15, 4294966272  ;;  %s1706_s9 = scalar_lea.sflag [#allocation9], %s1696_s24 }
 0x1ed   : > { %2535 = dma.done.wait (!%p2172_p0), %s1706_s9, 1024  }
 0x1ee   : > { %2537 = vsyncadd (!%p2172_p0), %s1706_s9, 4294966272  ;;  %p23_p12 = scmp.ge.s32.totalorder %s2651_s30, 4   ;;  %s3191_s18 = smov %s2544_s19 }
 0x1ef   : > { %s3192_s19 = smov %s2548_s20  ;;  %s3193_s20 = smov %s2682_s8 }
 0x1f0   : > { %s3194_s21 = smov %s2651_s30  ;;  %25 = sbr.rel (!%p23_p12) target bundleno = 8 (0x8), region = 105 }
 0x1f7   :  { %1711 = vsyncpa [#allocation3], 1 }
 0x1f8   :  { %1713 = vsyncpa [#allocation3 + $0x1], 1 }
 0x1f9   :  { %1714 = vsyncpa [#allocation6], 1 }
 0x1fa   :  { %1715 = vsyncpa [#allocation4], 1 }
 0x1fb   :  { %1717 = vsyncpa [#allocation4 + $0x1], 1 }
 0x1fc   :  { %1718 = vsyncpa [#allocation9], 1 }
 0x1fd   :  { %1720 = vsyncpa [#allocation9 + $0x1], 1 }

</bundles_post_ra>
